<compile_context>
chip_gen: v7x
topology: tpu7x:2x2x1
jax: 0.10.0
libtpu: 0.0.40
codegen_flags: <defaults>
</compile_context>

<pallas_src>
import functools

import jax
import jax.numpy as jnp
from jax.experimental import pallas as pl
from jax.experimental.pallas import tpu as pltpu


# ----------------------------------------------------------------------------
# Parallel matmul + bias kernel (hoisted input projection and FC projection).
# Both grid axes are "parallel" so v7x can shard them across its 2 TensorCores.
# ----------------------------------------------------------------------------
def _matmul_bias_kernel(x_ref, w_ref, b_ref, o_ref):
    x = x_ref[...].astype(w_ref.dtype)          # enables the bf16 MXU path
    acc = jnp.dot(x, w_ref[...], preferred_element_type=jnp.float32)
    o_ref[...] = (acc + b_ref[...]).astype(o_ref.dtype)


def _pick_tile(dim, cap, align):
    """Largest tile <= cap (aligned) that divides dim, else the full dim."""
    if dim <= cap:
        return dim                               # full dim is always legal
    t = (cap // align) * align
    while t >= align:
        if dim % t == 0:
            return t
        t -= align
    return dim


def matmul_bias(x, w, b, *, tile_m=256, tile_n=512):
    """y = x @ w + b (f32 accumulation), tiled over (M, N), both axes parallel."""
    M, K = x.shape
    K2, N = w.shape
    assert K == K2
    tm = _pick_tile(M, tile_m, 8)
    tn = _pick_tile(N, tile_n, 128)              # V-tiling keeps VMEM bounded (v7x)
    grid = (M // tm, N // tn)
    return pl.pallas_call(
        _matmul_bias_kernel,
        out_shape=jax.ShapeDtypeStruct((M, N), jnp.float32),
        grid=grid,
        in_specs=[
            pl.BlockSpec((tm, K), lambda i, j: (i, 0)),
            pl.BlockSpec((K, tn), lambda i, j: (0, j)),
            pl.BlockSpec((1, tn), lambda i, j: (0, j)),
        ],
        out_specs=pl.BlockSpec((tm, tn), lambda i, j: (i, j)),
        compiler_params=pltpu.CompilerParams(
            dimension_semantics=("parallel", "parallel")),
    )(x, w, b)


# ----------------------------------------------------------------------------
# Recurrent LSTM kernel: single invocation, fori_loop over T inside the body.
# Only h @ W_hh^T and the gate elementwise math sit on the serial path.
# ----------------------------------------------------------------------------
def _lstm_recurrence_kernel(gx_ref, whh_ref, hs_ref, hN_ref, cN_ref,
                            h_scr, c_scr, *, hidden_dim, seq_len):
    H = hidden_dim
    # hidden=None in the PyTorch forward -> zero initial state.
    # TODO(synk): support a user-supplied initial (h0, c0) by passing them in.
    h_scr[...] = jnp.zeros_like(h_scr)
    c_scr[...] = jnp.zeros_like(c_scr)

    def step(t, carry):
        h = h_scr[...]                                         # (B, H) f32
        gates = gx_ref[t] + jnp.dot(h.astype(whh_ref.dtype), whh_ref[...],
                                    preferred_element_type=jnp.float32)
        # PyTorch gate order: i, f, g, o.  (H is a multiple of 128 here, so the
        # gate slices stay lane-aligned; other H still works, just slower.)
        i = jax.nn.sigmoid(gates[:, 0:H])
        f = jax.nn.sigmoid(gates[:, H:2 * H])
        g = jnp.tanh(gates[:, 2 * H:3 * H])
        o = jax.nn.sigmoid(gates[:, 3 * H:4 * H])
        c_new = f * c_scr[...] + i * g
        h_new = o * jnp.tanh(c_new)
        c_scr[...] = c_new
        h_scr[...] = h_new
        hs_ref[t] = h_new
        return carry

    jax.lax.fori_loop(0, seq_len, step, 0, unroll=(seq_len <= 16))
    hN_ref[...] = h_scr[...]
    cN_ref[...] = c_scr[...]


def lstm_recurrence(gates_x, whh_t, *, hidden_dim):
    """gates_x: (T, B, 4H) precomputed input projection; whh_t: (H, 4H)."""
    T, Bp, _ = gates_x.shape
    H = hidden_dim
    kernel = functools.partial(_lstm_recurrence_kernel,
                               hidden_dim=H, seq_len=T)
    vm = pl.BlockSpec(memory_space=pltpu.MemorySpace.VMEM)
    # TODO(synk): for very long T, stream gates_x / hs blocks with
    # pltpu.emit_pipeline instead of holding the full (T, B, 4H) in VMEM.
    return pl.pallas_call(
        kernel,
        out_shape=(jax.ShapeDtypeStruct((T, Bp, H), jnp.float32),
                   jax.ShapeDtypeStruct((Bp, H), jnp.float32),
                   jax.ShapeDtypeStruct((Bp, H), jnp.float32)),
        in_specs=[vm, vm],
        out_specs=(vm, vm, vm),
        scratch_shapes=[pltpu.VMEM((Bp, H), jnp.float32),      # h state
                        pltpu.VMEM((Bp, H), jnp.float32)],     # c state
    )(gates_x, whh_t)


# ----------------------------------------------------------------------------
# Full forward pass (matches WordCompletionLSTM.forward with hidden=None).
# ----------------------------------------------------------------------------
def word_completion_forward(tokens, params, *, param_dtype=jnp.float32):
    """tokens: (B, T) int32.  Returns (logits (B,T,V), (h_n (1,B,H), c_n (1,B,H)))."""
    emb_table = params["embedding"]                            # (V, E)
    V, E = emb_table.shape
    H = params["w_hh"].shape[1]                                # w_hh: (4H, H)
    B, T = tokens.shape
    Bp = max(8, -(-B // 8) * 8)                                # pad batch to sublane multiple

    # Fused gather + time-major layout: (T, B, E); no (B, T, E) intermediate.
    x_tm = emb_table[tokens.T]
    if Bp != B:
        x_tm = jnp.pad(x_tm, ((0, 0), (0, Bp - B), (0, 0)))

    wih_t = params["w_ih"].T.astype(param_dtype)               # (E, 4H)
    whh_t = params["w_hh"].T.astype(param_dtype)               # (H, 4H)
    wfc_t = params["w_fc"].T.astype(param_dtype)               # (H, V)
    b_gate = (params["b_ih"] + params["b_hh"]).reshape(1, 4 * H).astype(jnp.float32)
    b_fc = params["b_fc"].reshape(1, V).astype(jnp.float32)

    # (1) Hoisted, parallel input projection for ALL timesteps at once.
    gx = matmul_bias(x_tm.reshape(T * Bp, E).astype(param_dtype),
                     wih_t, b_gate).reshape(T, Bp, 4 * H)

    # (2) Serial recurrence only (single pallas_call, fori_loop over T inside).
    hs_tm, h_n, c_n = lstm_recurrence(gx, whh_t, hidden_dim=H)

    # (3) Hoisted, parallel, V-tiled FC projection; the cheap (T,B,H)->(B,T,H)
    #     reorder happens on hidden states (H << V), so the big (B,T,V) logits
    #     tensor is produced batch-first directly and never transposed.
    hs_bf = jnp.transpose(hs_tm[:, :B, :], (1, 0, 2)).reshape(B * T, H)
    logits = matmul_bias(hs_bf, wfc_t, b_fc).reshape(B, T, V)

    hidden = (h_n[None, :B, :], c_n[None, :B, :])              # each (1, B, H)
    return logits, hidden


# ----------------------------------------------------------------------------
# Parameters + pure-JAX reference (torch semantics) for the correctness check.
# ----------------------------------------------------------------------------
def init_params(key, vocab_size, embedding_dim, hidden_dim):
    ks = jax.random.split(key, 8)
    H, E, V = hidden_dim, embedding_dim, vocab_size
    s = 1.0 / jnp.sqrt(H)
    u = lambda k, shape: jax.random.uniform(k, shape, jnp.float32, -s, s)
    return {
        "embedding": jax.random.normal(ks[0], (V, E), jnp.float32),  # nn.Embedding
        "w_ih": u(ks[1], (4 * H, E)),                                # lstm.weight_ih_l0
        "w_hh": u(ks[2], (4 * H, H)),                                # lstm.weight_hh_l0
        "b_ih": u(ks[3], (4 * H,)),                                  # lstm.bias_ih_l0
        "b_hh": u(ks[4], (4 * H,)),                                  # lstm.bias_hh_l0
        "w_fc": u(ks[5], (V, H)),                                    # fc.weight
        "b_fc": u(ks[6], (V,)),                                      # fc.bias
    }


def reference_forward(tokens, params):
    emb = params["embedding"][tokens]                 # (B, T, E)
    B, T, E = emb.shape
    H = params["w_hh"].shape[1]
    wih_t = params["w_ih"].T
    whh_t = params["w_hh"].T
    b = params["b_ih"] + params["b_hh"]

    def step(carry, x_t):
        h, c = carry
        gates = x_t @ wih_t + h @ whh_t + b
        i = jax.nn.sigmoid(gates[:, 0:H])
        f = jax.nn.sigmoid(gates[:, H:2 * H])
        g = jnp.tanh(gates[:, 2 * H:3 * H])
        o = jax.nn.sigmoid(gates[:, 3 * H:4 * H])
        c = f * c + i * g
        h = o * jnp.tanh(c)
        return (h, c), h

    h0 = jnp.zeros((B, H), jnp.float32)
    (h_n, c_n), hs = jax.lax.scan(step, (h0, h0), jnp.transpose(emb, (1, 0, 2)))
    out = jnp.transpose(hs, (1, 0, 2)) @ params["w_fc"].T + params["b_fc"]
    return out, (h_n[None], c_n[None])


if __name__ == "__main__":
    VOCAB, E, H = 256, 32, 128
    B, T = 2, 8

    key = jax.random.PRNGKey(0)
    k_tok, k_par = jax.random.split(key)
    params = init_params(k_par, VOCAB, E, H)
    tokens = jax.random.randint(k_tok, (B, T), 0, VOCAB, dtype=jnp.int32)

    # f32 path: exact-ish, checked against the pure-JAX reference.
    fwd_f32 = jax.jit(word_completion_forward)
    logits, (h_n, c_n) = jax.block_until_ready(fwd_f32(tokens, params))

    ref_logits, (ref_h, ref_c) = reference_forward(tokens, params)
    assert logits.shape == (B, T, VOCAB)
    assert h_n.shape == (1, B, H) and c_n.shape == (1, B, H)
    assert jnp.allclose(logits, ref_logits, atol=1e-3, rtol=1e-3)
    assert jnp.allclose(h_n, ref_h, atol=1e-3, rtol=1e-3)
    assert jnp.allclose(c_n, ref_c, atol=1e-3, rtol=1e-3)

    # bf16 weight path (recommended on v6e/v7x): verify it runs and is finite.
    fwd_bf16 = jax.jit(functools.partial(word_completion_forward,
                                         param_dtype=jnp.bfloat16))
    logits_bf16, _ = jax.block_until_ready(fwd_bf16(tokens, params))
    assert logits_bf16.shape == (B, T, VOCAB)
    assert bool(jnp.all(jnp.isfinite(logits_bf16)))

    print("KERNEL_OK")
</pallas_src>

<mosaic_0001>
module attributes {stable_mosaic.version = 11 : i64} {
  func.func @_matmul_bias_kernel(%arg0: i32, %arg1: i32, %arg2: memref<64x32xf32, #tpu.memory_space<vmem>>, %arg3: memref<32x512xf32, #tpu.memory_space<vmem>>, %arg4: memref<1x512xf32, #tpu.memory_space<vmem>>, %arg5: memref<64x512xf32, #tpu.memory_space<vmem>>) attributes {dimension_semantics = [#tpu.dimension_semantics<parallel>, #tpu.dimension_semantics<parallel>], iteration_bounds = array<i64: 1, 1>, scalar_prefetch = 0 : i64, scratch_operands = 0 : i64, tpu.core_type = #tpu.core_type<tc>, window_params = [{transform_indices = @transform_0, window_bounds = array<i64: 64, 32>}, {transform_indices = @transform_1, window_bounds = array<i64: 32, 512>}, {transform_indices = @transform_2, window_bounds = array<i64: 1, 512>}, {transform_indices = @transform_3, window_bounds = array<i64: 64, 512>}]} {
    %c0 = arith.constant 0 : index
    %c0_0 = arith.constant 0 : index
    %0 = vector.load %arg2[%c0, %c0_0] : memref<64x32xf32, #tpu.memory_space<vmem>>, vector<64x32xf32>
    %c0_1 = arith.constant 0 : index
    %c0_2 = arith.constant 0 : index
    %1 = vector.load %arg3[%c0_1, %c0_2] : memref<32x512xf32, #tpu.memory_space<vmem>>, vector<32x512xf32>
    %cst = arith.constant dense<0.000000e+00> : vector<64x512xf32>
    %2 = tpu.matmul %0, %1, %cst {dimension_numbers = #tpu.dot_dimension_numbers<[1], [0], [0], [1], [0, 0, 1, 1], [], []>} : vector<64x32xf32>, vector<32x512xf32>, vector<64x512xf32> -> vector<64x512xf32>
    %c0_3 = arith.constant 0 : index
    %c0_4 = arith.constant 0 : index
    %3 = vector.load %arg4[%c0_3, %c0_4] : memref<1x512xf32, #tpu.memory_space<vmem>>, vector<1x512xf32>
    %4 = vector.broadcast %3 : vector<1x512xf32> to vector<64x512xf32>
    %5 = arith.addf %2, %4 : vector<64x512xf32>
    %c0_5 = arith.constant 0 : index
    %c0_6 = arith.constant 0 : index
    %6 = vector.load %arg5[%c0_5, %c0_6] : memref<64x512xf32, #tpu.memory_space<vmem>>, vector<64x512xf32>
    tpu.vector_store %arg5[%c0_5, %c0_6], %5 {strides = array<i32>} : memref<64x512xf32, #tpu.memory_space<vmem>>, vector<64x512xf32>,
    return
  }
  func.func @transform_0(%arg0: i32, %arg1: i32) -> (i32, i32) {
    %c0_i32 = arith.constant 0 : i32
    %c0_i32_0 = arith.constant 0 : i32
    return %arg0, %c0_i32 : i32, i32
  }
  func.func @transform_1(%arg0: i32, %arg1: i32) -> (i32, i32) {
    %c0_i32 = arith.constant 0 : i32
    %c0_i32_0 = arith.constant 0 : i32
    return %c0_i32, %arg1 : i32, i32
  }
  func.func @transform_2(%arg0: i32, %arg1: i32) -> (i32, i32) {
    %c0_i32 = arith.constant 0 : i32
    %c0_i32_0 = arith.constant 0 : i32
    return %c0_i32, %arg1 : i32, i32
  }
  func.func @transform_3(%arg0: i32, %arg1: i32) -> (i32, i32) {
    %c0_i32 = arith.constant 0 : i32
    return %arg0, %arg1 : i32, i32
  }
}

module attributes {stable_mosaic.version = 11 : i64} {
  func.func @_lstm_recurrence_kernel(%arg0: memref<8x8x512xf32, #tpu.memory_space<vmem>>, %arg1: memref<128x512xf32, #tpu.memory_space<vmem>>, %arg2: memref<8x8x128xf32, #tpu.memory_space<vmem>>, %arg3: memref<8x128xf32, #tpu.memory_space<vmem>>, %arg4: memref<8x128xf32, #tpu.memory_space<vmem>>, %arg5: memref<8x128xf32, #tpu.memory_space<vmem>>, %arg6: memref<8x128xf32, #tpu.memory_space<vmem>>) attributes {dimension_semantics = [], scalar_prefetch = 0 : i64, scratch_operands = 2 : i64, tpu.core_type = #tpu.core_type<tc>} {
    %cst = arith.constant 0.000000e+00 : f32
    %0 = vector.broadcast %cst : f32 to vector<8x128xf32>
    %c0 = arith.constant 0 : index
    %c0_0 = arith.constant 0 : index
    %1 = vector.load %arg5[%c0, %c0_0] : memref<8x128xf32, #tpu.memory_space<vmem>>, vector<8x128xf32>
    tpu.vector_store %arg5[%c0, %c0_0], %0 {strides = array<i32>} : memref<8x128xf32, #tpu.memory_space<vmem>>, vector<8x128xf32>,
    %cst_1 = arith.constant 0.000000e+00 : f32
    %2 = vector.broadcast %cst_1 : f32 to vector<8x128xf32>
    %c0_2 = arith.constant 0 : index
    %c0_3 = arith.constant 0 : index
    %3 = vector.load %arg6[%c0_2, %c0_3] : memref<8x128xf32, #tpu.memory_space<vmem>>, vector<8x128xf32>
    tpu.vector_store %arg6[%c0_2, %c0_3], %2 {strides = array<i32>} : memref<8x128xf32, #tpu.memory_space<vmem>>, vector<8x128xf32>,
    %c0_i32 = arith.constant 0 : i32
    %c0_4 = arith.constant 0 : index
    %c0_5 = arith.constant 0 : index
    %4 = vector.load %arg5[%c0_4, %c0_5] : memref<8x128xf32, #tpu.memory_space<vmem>>, vector<8x128xf32>
    %5 = arith.index_cast %c0_i32 : i32 to index
    %c0_6 = arith.constant 0 : index
    %c0_7 = arith.constant 0 : index
    %6 = vector.load %arg0[%5, %c0_6, %c0_7] : memref<8x8x512xf32, #tpu.memory_space<vmem>>, vector<1x8x512xf32>
    %7 = vector.shape_cast %6 : vector<1x8x512xf32> to vector<8x512xf32>
    %c0_8 = arith.constant 0 : index
    %c0_9 = arith.constant 0 : index
    %8 = vector.load %arg1[%c0_8, %c0_9] : memref<128x512xf32, #tpu.memory_space<vmem>>, vector<128x512xf32>
    %cst_10 = arith.constant dense<0.000000e+00> : vector<8x512xf32>
    %9 = tpu.matmul %4, %8, %cst_10 {dimension_numbers = #tpu.dot_dimension_numbers<[1], [0], [0], [1], [0, 0, 1, 1], [], []>} : vector<8x128xf32>, vector<128x512xf32>, vector<8x512xf32> -> vector<8x512xf32>
    %10 = arith.addf %7, %9 : vector<8x512xf32>
    %11 = vector.extract_strided_slice %10 {offsets = [0, 0], sizes = [8, 128], strides = [1, 1]} : vector<8x512xf32> to vector<8x128xf32>
    %12 = arith.negf %11 : vector<8x128xf32>
    %13 = math.exp %12 : vector<8x128xf32>
    %cst_11 = arith.constant 1.000000e+00 : f32
    %14 = vector.broadcast %cst_11 : f32 to vector<8x128xf32>
    %15 = arith.addf %14, %13 : vector<8x128xf32>
    %16 = arith.divf %14, %15 : vector<8x128xf32>
    %17 = vector.extract_strided_slice %10 {offsets = [0, 128], sizes = [8, 128], strides = [1, 1]} : vector<8x512xf32> to vector<8x128xf32>
    %18 = arith.negf %17 : vector<8x128xf32>
    %19 = math.exp %18 : vector<8x128xf32>
    %cst_12 = arith.constant 1.000000e+00 : f32
    %20 = vector.broadcast %cst_12 : f32 to vector<8x128xf32>
    %21 = arith.addf %20, %19 : vector<8x128xf32>
    %22 = arith.divf %20, %21 : vector<8x128xf32>
    %23 = vector.extract_strided_slice %10 {offsets = [0, 256], sizes = [8, 128], strides = [1, 1]} : vector<8x512xf32> to vector<8x128xf32>
    %24 = math.tanh %23 : vector<8x128xf32>
    %25 = vector.extract_strided_slice %10 {offsets = [0, 384], sizes = [8, 128], strides = [1, 1]} : vector<8x512xf32> to vector<8x128xf32>
    %26 = arith.negf %25 : vector<8x128xf32>
    %27 = math.exp %26 : vector<8x128xf32>
    %cst_13 = arith.constant 1.000000e+00 : f32
    %28 = vector.broadcast %cst_13 : f32 to vector<8x128xf32>
    %29 = arith.addf %28, %27 : vector<8x128xf32>
    %30 = arith.divf %28, %29 : vector<8x128xf32>
    %c0_14 = arith.constant 0 : index
    %c0_15 = arith.constant 0 : index
    %31 = vector.load %arg6[%c0_14, %c0_15] : memref<8x128xf32, #tpu.memory_space<vmem>>, vector<8x128xf32>
    %32 = arith.mulf %22, %31 : vector<8x128xf32>
    %33 = arith.mulf %16, %24 : vector<8x128xf32>
    %34 = arith.addf %32, %33 : vector<8x128xf32>
    %35 = math.tanh %34 : vector<8x128xf32>
    %36 = arith.mulf %30, %35 : vector<8x128xf32>
    %c0_16 = arith.constant 0 : index
    %c0_17 = arith.constant 0 : index
    %37 = vector.load %arg6[%c0_16, %c0_17] : memref<8x128xf32, #tpu.memory_space<vmem>>, vector<8x128xf32>
    tpu.vector_store %arg6[%c0_16, %c0_17], %34 {strides = array<i32>} : memref<8x128xf32, #tpu.memory_space<vmem>>, vector<8x128xf32>,
    %c0_18 = arith.constant 0 : index
    %c0_19 = arith.constant 0 : index
    %38 = vector.load %arg5[%c0_18, %c0_19] : memref<8x128xf32, #tpu.memory_space<vmem>>, vector<8x128xf32>
    tpu.vector_store %arg5[%c0_18, %c0_19], %36 {strides = array<i32>} : memref<8x128xf32, #tpu.memory_space<vmem>>, vector<8x128xf32>,
    %39 = arith.index_cast %c0_i32 : i32 to index
    %c0_20 = arith.constant 0 : index
    %c0_21 = arith.constant 0 : index
    %40 = vector.load %arg2[%39, %c0_20, %c0_21] : memref<8x8x128xf32, #tpu.memory_space<vmem>>, vector<1x8x128xf32>
    %41 = vector.shape_cast %40 : vector<1x8x128xf32> to vector<8x128xf32>
    %42 = vector.shape_cast %36 : vector<8x128xf32> to vector<1x8x128xf32>
    tpu.vector_store %arg2[%39, %c0_20, %c0_21], %42 {strides = array<i32>} : memref<8x8x128xf32, #tpu.memory_space<vmem>>, vector<1x8x128xf32>,
    %c1_i32 = arith.constant 1 : i32
    %c0_22 = arith.constant 0 : index
    %c0_23 = arith.constant 0 : index
    %43 = vector.load %arg5[%c0_22, %c0_23] : memref<8x128xf32, #tpu.memory_space<vmem>>, vector<8x128xf32>
    %44 = arith.index_cast %c1_i32 : i32 to index
    %c0_24 = arith.constant 0 : index
    %c0_25 = arith.constant 0 : index
    %45 = vector.load %arg0[%44, %c0_24, %c0_25] : memref<8x8x512xf32, #tpu.memory_space<vmem>>, vector<1x8x512xf32>
    %46 = vector.shape_cast %45 : vector<1x8x512xf32> to vector<8x512xf32>
    %c0_26 = arith.constant 0 : index
    %c0_27 = arith.constant 0 : index
    %47 = vector.load %arg1[%c0_26, %c0_27] : memref<128x512xf32, #tpu.memory_space<vmem>>, vector<128x512xf32>
    %cst_28 = arith.constant dense<0.000000e+00> : vector<8x512xf32>
    %48 = tpu.matmul %43, %47, %cst_28 {dimension_numbers = #tpu.dot_dimension_numbers<[1], [0], [0], [1], [0, 0, 1, 1], [], []>} : vector<8x128xf32>, vector<128x512xf32>, vector<8x512xf32> -> vector<8x512xf32>
    %49 = arith.addf %46, %48 : vector<8x512xf32>
    %50 = vector.extract_strided_slice %49 {offsets = [0, 0], sizes = [8, 128], strides = [1, 1]} : vector<8x512xf32> to vector<8x128xf32>
    %51 = arith.negf %50 : vector<8x128xf32>
    %52 = math.exp %51 : vector<8x128xf32>
    %cst_29 = arith.constant 1.000000e+00 : f32
    %53 = vector.broadcast %cst_29 : f32 to vector<8x128xf32>
    %54 = arith.addf %53, %52 : vector<8x128xf32>
    %55 = arith.divf %53, %54 : vector<8x128xf32>
    %56 = vector.extract_strided_slice %49 {offsets = [0, 128], sizes = [8, 128], strides = [1, 1]} : vector<8x512xf32> to vector<8x128xf32>
    %57 = arith.negf %56 : vector<8x128xf32>
    %58 = math.exp %57 : vector<8x128xf32>
    %cst_30 = arith.constant 1.000000e+00 : f32
    %59 = vector.broadcast %cst_30 : f32 to vector<8x128xf32>
    %60 = arith.addf %59, %58 : vector<8x128xf32>
    %61 = arith.divf %59, %60 : vector<8x128xf32>
    %62 = vector.extract_strided_slice %49 {offsets = [0, 256], sizes = [8, 128], strides = [1, 1]} : vector<8x512xf32> to vector<8x128xf32>
    %63 = math.tanh %62 : vector<8x128xf32>
    %64 = vector.extract_strided_slice %49 {offsets = [0, 384], sizes = [8, 128], strides = [1, 1]} : vector<8x512xf32> to vector<8x128xf32>
    %65 = arith.negf %64 : vector<8x128xf32>
    %66 = math.exp %65 : vector<8x128xf32>
    %cst_31 = arith.constant 1.000000e+00 : f32
    %67 = vector.broadcast %cst_31 : f32 to vector<8x128xf32>
    %68 = arith.addf %67, %66 : vector<8x128xf32>
    %69 = arith.divf %67, %68 : vector<8x128xf32>
    %c0_32 = arith.constant 0 : index
    %c0_33 = arith.constant 0 : index
    %70 = vector.load %arg6[%c0_32, %c0_33] : memref<8x128xf32, #tpu.memory_space<vmem>>, vector<8x128xf32>
    %71 = arith.mulf %61, %70 : vector<8x128xf32>
    %72 = arith.mulf %55, %63 : vector<8x128xf32>
    %73 = arith.addf %71, %72 : vector<8x128xf32>
    %74 = math.tanh %73 : vector<8x128xf32>
    %75 = arith.mulf %69, %74 : vector<8x128xf32>
    %c0_34 = arith.constant 0 : index
    %c0_35 = arith.constant 0 : index
    %76 = vector.load %arg6[%c0_34, %c0_35] : memref<8x128xf32, #tpu.memory_space<vmem>>, vector<8x128xf32>
    tpu.vector_store %arg6[%c0_34, %c0_35], %73 {strides = array<i32>} : memref<8x128xf32, #tpu.memory_space<vmem>>, vector<8x128xf32>,
    %c0_36 = arith.constant 0 : index
    %c0_37 = arith.constant 0 : index
    %77 = vector.load %arg5[%c0_36, %c0_37] : memref<8x128xf32, #tpu.memory_space<vmem>>, vector<8x128xf32>
    tpu.vector_store %arg5[%c0_36, %c0_37], %75 {strides = array<i32>} : memref<8x128xf32, #tpu.memory_space<vmem>>, vector<8x128xf32>,
    %78 = arith.index_cast %c1_i32 : i32 to index
    %c0_38 = arith.constant 0 : index
    %c0_39 = arith.constant 0 : index
    %79 = vector.load %arg2[%78, %c0_38, %c0_39] : memref<8x8x128xf32, #tpu.memory_space<vmem>>, vector<1x8x128xf32>
    %80 = vector.shape_cast %79 : vector<1x8x128xf32> to vector<8x128xf32>
    %81 = vector.shape_cast %75 : vector<8x128xf32> to vector<1x8x128xf32>
    tpu.vector_store %arg2[%78, %c0_38, %c0_39], %81 {strides = array<i32>} : memref<8x8x128xf32, #tpu.memory_space<vmem>>, vector<1x8x128xf32>,
    %c2_i32 = arith.constant 2 : i32
    %c0_40 = arith.constant 0 : index
    %c0_41 = arith.constant 0 : index
    %82 = vector.load %arg5[%c0_40, %c0_41] : memref<8x128xf32, #tpu.memory_space<vmem>>, vector<8x128xf32>
    %83 = arith.index_cast %c2_i32 : i32 to index
    %c0_42 = arith.constant 0 : index
    %c0_43 = arith.constant 0 : index
    %84 = vector.load %arg0[%83, %c0_42, %c0_43] : memref<8x8x512xf32, #tpu.memory_space<vmem>>, vector<1x8x512xf32>
    %85 = vector.shape_cast %84 : vector<1x8x512xf32> to vector<8x512xf32>
    %c0_44 = arith.constant 0 : index
    %c0_45 = arith.constant 0 : index
    %86 = vector.load %arg1[%c0_44, %c0_45] : memref<128x512xf32, #tpu.memory_space<vmem>>, vector<128x512xf32>
    %cst_46 = arith.constant dense<0.000000e+00> : vector<8x512xf32>
    %87 = tpu.matmul %82, %86, %cst_46 {dimension_numbers = #tpu.dot_dimension_numbers<[1], [0], [0], [1], [0, 0, 1, 1], [], []>} : vector<8x128xf32>, vector<128x512xf32>, vector<8x512xf32> -> vector<8x512xf32>
    %88 = arith.addf %85, %87 : vector<8x512xf32>
    %89 = vector.extract_strided_slice %88 {offsets = [0, 0], sizes = [8, 128], strides = [1, 1]} : vector<8x512xf32> to vector<8x128xf32>
    %90 = arith.negf %89 : vector<8x128xf32>
    %91 = math.exp %90 : vector<8x128xf32>
    %cst_47 = arith.constant 1.000000e+00 : f32
    %92 = vector.broadcast %cst_47 : f32 to vector<8x128xf32>
    %93 = arith.addf %92, %91 : vector<8x128xf32>
    %94 = arith.divf %92, %93 : vector<8x128xf32>
    %95 = vector.extract_strided_slice %88 {offsets = [0, 128], sizes = [8, 128], strides = [1, 1]} : vector<8x512xf32> to vector<8x128xf32>
    %96 = arith.negf %95 : vector<8x128xf32>
    %97 = math.exp %96 : vector<8x128xf32>
    %cst_48 = arith.constant 1.000000e+00 : f32
    %98 = vector.broadcast %cst_48 : f32 to vector<8x128xf32>
    %99 = arith.addf %98, %97 : vector<8x128xf32>
    %100 = arith.divf %98, %99 : vector<8x128xf32>
    %101 = vector.extract_strided_slice %88 {offsets = [0, 256], sizes = [8, 128], strides = [1, 1]} : vector<8x512xf32> to vector<8x128xf32>
    %102 = math.tanh %101 : vector<8x128xf32>
    %103 = vector.extract_strided_slice %88 {offsets = [0, 384], sizes = [8, 128], strides = [1, 1]} : vector<8x512xf32> to vector<8x128xf32>
    %104 = arith.negf %103 : vector<8x128xf32>
    %105 = math.exp %104 : vector<8x128xf32>
    %cst_49 = arith.constant 1.000000e+00 : f32
    %106 = vector.broadcast %cst_49 : f32 to vector<8x128xf32>
    %107 = arith.addf %106, %105 : vector<8x128xf32>
    %108 = arith.divf %106, %107 : vector<8x128xf32>
    %c0_50 = arith.constant 0 : index
    %c0_51 = arith.constant 0 : index
    %109 = vector.load %arg6[%c0_50, %c0_51] : memref<8x128xf32, #tpu.memory_space<vmem>>, vector<8x128xf32>
    %110 = arith.mulf %100, %109 : vector<8x128xf32>
    %111 = arith.mulf %94, %102 : vector<8x128xf32>
    %112 = arith.addf %110, %111 : vector<8x128xf32>
    %113 = math.tanh %112 : vector<8x128xf32>
    %114 = arith.mulf %108, %113 : vector<8x128xf32>
    %c0_52 = arith.constant 0 : index
    %c0_53 = arith.constant 0 : index
    %115 = vector.load %arg6[%c0_52, %c0_53] : memref<8x128xf32, #tpu.memory_space<vmem>>, vector<8x128xf32>
    tpu.vector_store %arg6[%c0_52, %c0_53], %112 {strides = array<i32>} : memref<8x128xf32, #tpu.memory_space<vmem>>, vector<8x128xf32>,
    %c0_54 = arith.constant 0 : index
    %c0_55 = arith.constant 0 : index
    %116 = vector.load %arg5[%c0_54, %c0_55] : memref<8x128xf32, #tpu.memory_space<vmem>>, vector<8x128xf32>
    tpu.vector_store %arg5[%c0_54, %c0_55], %114 {strides = array<i32>} : memref<8x128xf32, #tpu.memory_space<vmem>>, vector<8x128xf32>,
    %117 = arith.index_cast %c2_i32 : i32 to index
    %c0_56 = arith.constant 0 : index
    %c0_57 = arith.constant 0 : index
    %118 = vector.load %arg2[%117, %c0_56, %c0_57] : memref<8x8x128xf32, #tpu.memory_space<vmem>>, vector<1x8x128xf32>
    %119 = vector.shape_cast %118 : vector<1x8x128xf32> to vector<8x128xf32>
    %120 = vector.shape_cast %114 : vector<8x128xf32> to vector<1x8x128xf32>
    tpu.vector_store %arg2[%117, %c0_56, %c0_57], %120 {strides = array<i32>} : memref<8x8x128xf32, #tpu.memory_space<vmem>>, vector<1x8x128xf32>,
    %c3_i32 = arith.constant 3 : i32
    %c0_58 = arith.constant 0 : index
    %c0_59 = arith.constant 0 : index
    %121 = vector.load %arg5[%c0_58, %c0_59] : memref<8x128xf32, #tpu.memory_space<vmem>>, vector<8x128xf32>
    %122 = arith.index_cast %c3_i32 : i32 to index
    %c0_60 = arith.constant 0 : index
    %c0_61 = arith.constant 0 : index
    %123 = vector.load %arg0[%122, %c0_60, %c0_61] : memref<8x8x512xf32, #tpu.memory_space<vmem>>, vector<1x8x512xf32>
    %124 = vector.shape_cast %123 : vector<1x8x512xf32> to vector<8x512xf32>
    %c0_62 = arith.constant 0 : index
    %c0_63 = arith.constant 0 : index
    %125 = vector.load %arg1[%c0_62, %c0_63] : memref<128x512xf32, #tpu.memory_space<vmem>>, vector<128x512xf32>
    %cst_64 = arith.constant dense<0.000000e+00> : vector<8x512xf32>
    %126 = tpu.matmul %121, %125, %cst_64 {dimension_numbers = #tpu.dot_dimension_numbers<[1], [0], [0], [1], [0, 0, 1, 1], [], []>} : vector<8x128xf32>, vector<128x512xf32>, vector<8x512xf32> -> vector<8x512xf32>
    %127 = arith.addf %124, %126 : vector<8x512xf32>
    %128 = vector.extract_strided_slice %127 {offsets = [0, 0], sizes = [8, 128], strides = [1, 1]} : vector<8x512xf32> to vector<8x128xf32>
    %129 = arith.negf %128 : vector<8x128xf32>
    %130 = math.exp %129 : vector<8x128xf32>
    %cst_65 = arith.constant 1.000000e+00 : f32
    %131 = vector.broadcast %cst_65 : f32 to vector<8x128xf32>
    %132 = arith.addf %131, %130 : vector<8x128xf32>
    %133 = arith.divf %131, %132 : vector<8x128xf32>
    %134 = vector.extract_strided_slice %127 {offsets = [0, 128], sizes = [8, 128], strides = [1, 1]} : vector<8x512xf32> to vector<8x128xf32>
    %135 = arith.negf %134 : vector<8x128xf32>
    %136 = math.exp %135 : vector<8x128xf32>
    %cst_66 = arith.constant 1.000000e+00 : f32
    %137 = vector.broadcast %cst_66 : f32 to vector<8x128xf32>
    %138 = arith.addf %137, %136 : vector<8x128xf32>
    %139 = arith.divf %137, %138 : vector<8x128xf32>
    %140 = vector.extract_strided_slice %127 {offsets = [0, 256], sizes = [8, 128], strides = [1, 1]} : vector<8x512xf32> to vector<8x128xf32>
    %141 = math.tanh %140 : vector<8x128xf32>
    %142 = vector.extract_strided_slice %127 {offsets = [0, 384], sizes = [8, 128], strides = [1, 1]} : vector<8x512xf32> to vector<8x128xf32>
    %143 = arith.negf %142 : vector<8x128xf32>
    %144 = math.exp %143 : vector<8x128xf32>
    %cst_67 = arith.constant 1.000000e+00 : f32
    %145 = vector.broadcast %cst_67 : f32 to vector<8x128xf32>
    %146 = arith.addf %145, %144 : vector<8x128xf32>
    %147 = arith.divf %145, %146 : vector<8x128xf32>
    %c0_68 = arith.constant 0 : index
    %c0_69 = arith.constant 0 : index
    %148 = vector.load %arg6[%c0_68, %c0_69] : memref<8x128xf32, #tpu.memory_space<vmem>>, vector<8x128xf32>
    %149 = arith.mulf %139, %148 : vector<8x128xf32>
    %150 = arith.mulf %133, %141 : vector<8x128xf32>
    %151 = arith.addf %149, %150 : vector<8x128xf32>
    %152 = math.tanh %151 : vector<8x128xf32>
    %153 = arith.mulf %147, %152 : vector<8x128xf32>
    %c0_70 = arith.constant 0 : index
    %c0_71 = arith.constant 0 : index
    %154 = vector.load %arg6[%c0_70, %c0_71] : memref<8x128xf32, #tpu.memory_space<vmem>>, vector<8x128xf32>
    tpu.vector_store %arg6[%c0_70, %c0_71], %151 {strides = array<i32>} : memref<8x128xf32, #tpu.memory_space<vmem>>, vector<8x128xf32>,
    %c0_72 = arith.constant 0 : index
    %c0_73 = arith.constant 0 : index
    %155 = vector.load %arg5[%c0_72, %c0_73] : memref<8x128xf32, #tpu.memory_space<vmem>>, vector<8x128xf32>
    tpu.vector_store %arg5[%c0_72, %c0_73], %153 {strides = array<i32>} : memref<8x128xf32, #tpu.memory_space<vmem>>, vector<8x128xf32>,
    %156 = arith.index_cast %c3_i32 : i32 to index
    %c0_74 = arith.constant 0 : index
    %c0_75 = arith.constant 0 : index
    %157 = vector.load %arg2[%156, %c0_74, %c0_75] : memref<8x8x128xf32, #tpu.memory_space<vmem>>, vector<1x8x128xf32>
    %158 = vector.shape_cast %157 : vector<1x8x128xf32> to vector<8x128xf32>
    %159 = vector.shape_cast %153 : vector<8x128xf32> to vector<1x8x128xf32>
    tpu.vector_store %arg2[%156, %c0_74, %c0_75], %159 {strides = array<i32>} : memref<8x8x128xf32, #tpu.memory_space<vmem>>, vector<1x8x128xf32>,
    %c4_i32 = arith.constant 4 : i32
    %c0_76 = arith.constant 0 : index
    %c0_77 = arith.constant 0 : index
    %160 = vector.load %arg5[%c0_76, %c0_77] : memref<8x128xf32, #tpu.memory_space<vmem>>, vector<8x128xf32>
    %161 = arith.index_cast %c4_i32 : i32 to index
    %c0_78 = arith.constant 0 : index
    %c0_79 = arith.constant 0 : index
    %162 = vector.load %arg0[%161, %c0_78, %c0_79] : memref<8x8x512xf32, #tpu.memory_space<vmem>>, vector<1x8x512xf32>
    %163 = vector.shape_cast %162 : vector<1x8x512xf32> to vector<8x512xf32>
    %c0_80 = arith.constant 0 : index
    %c0_81 = arith.constant 0 : index
    %164 = vector.load %arg1[%c0_80, %c0_81] : memref<128x512xf32, #tpu.memory_space<vmem>>, vector<128x512xf32>
    %cst_82 = arith.constant dense<0.000000e+00> : vector<8x512xf32>
    %165 = tpu.matmul %160, %164, %cst_82 {dimension_numbers = #tpu.dot_dimension_numbers<[1], [0], [0], [1], [0, 0, 1, 1], [], []>} : vector<8x128xf32>, vector<128x512xf32>, vector<8x512xf32> -> vector<8x512xf32>
    %166 = arith.addf %163, %165 : vector<8x512xf32>
    %167 = vector.extract_strided_slice %166 {offsets = [0, 0], sizes = [8, 128], strides = [1, 1]} : vector<8x512xf32> to vector<8x128xf32>
    %168 = arith.negf %167 : vector<8x128xf32>
    %169 = math.exp %168 : vector<8x128xf32>
    %cst_83 = arith.constant 1.000000e+00 : f32
    %170 = vector.broadcast %cst_83 : f32 to vector<8x128xf32>
    %171 = arith.addf %170, %169 : vector<8x128xf32>
    %172 = arith.divf %170, %171 : vector<8x128xf32>
    %173 = vector.extract_strided_slice %166 {offsets = [0, 128], sizes = [8, 128], strides = [1, 1]} : vector<8x512xf32> to vector<8x128xf32>
    %174 = arith.negf %173 : vector<8x128xf32>
    %175 = math.exp %174 : vector<8x128xf32>
    %cst_84 = arith.constant 1.000000e+00 : f32
    %176 = vector.broadcast %cst_84 : f32 to vector<8x128xf32>
    %177 = arith.addf %176, %175 : vector<8x128xf32>
    %178 = arith.divf %176, %177 : vector<8x128xf32>
    %179 = vector.extract_strided_slice %166 {offsets = [0, 256], sizes = [8, 128], strides = [1, 1]} : vector<8x512xf32> to vector<8x128xf32>
    %180 = math.tanh %179 : vector<8x128xf32>
    %181 = vector.extract_strided_slice %166 {offsets = [0, 384], sizes = [8, 128], strides = [1, 1]} : vector<8x512xf32> to vector<8x128xf32>
    %182 = arith.negf %181 : vector<8x128xf32>
    %183 = math.exp %182 : vector<8x128xf32>
    %cst_85 = arith.constant 1.000000e+00 : f32
    %184 = vector.broadcast %cst_85 : f32 to vector<8x128xf32>
    %185 = arith.addf %184, %183 : vector<8x128xf32>
    %186 = arith.divf %184, %185 : vector<8x128xf32>
    %c0_86 = arith.constant 0 : index
    %c0_87 = arith.constant 0 : index
    %187 = vector.load %arg6[%c0_86, %c0_87] : memref<8x128xf32, #tpu.memory_space<vmem>>, vector<8x128xf32>
    %188 = arith.mulf %178, %187 : vector<8x128xf32>
    %189 = arith.mulf %172, %180 : vector<8x128xf32>
    %190 = arith.addf %188, %189 : vector<8x128xf32>
    %191 = math.tanh %190 : vector<8x128xf32>
    %192 = arith.mulf %186, %191 : vector<8x128xf32>
    %c0_88 = arith.constant 0 : index
    %c0_89 = arith.constant 0 : index
    %193 = vector.load %arg6[%c0_88, %c0_89] : memref<8x128xf32, #tpu.memory_space<vmem>>, vector<8x128xf32>
    tpu.vector_store %arg6[%c0_88, %c0_89], %190 {strides = array<i32>} : memref<8x128xf32, #tpu.memory_space<vmem>>, vector<8x128xf32>,
    %c0_90 = arith.constant 0 : index
    %c0_91 = arith.constant 0 : index
    %194 = vector.load %arg5[%c0_90, %c0_91] : memref<8x128xf32, #tpu.memory_space<vmem>>, vector<8x128xf32>
    tpu.vector_store %arg5[%c0_90, %c0_91], %192 {strides = array<i32>} : memref<8x128xf32, #tpu.memory_space<vmem>>, vector<8x128xf32>,
    %195 = arith.index_cast %c4_i32 : i32 to index
    %c0_92 = arith.constant 0 : index
    %c0_93 = arith.constant 0 : index
    %196 = vector.load %arg2[%195, %c0_92, %c0_93] : memref<8x8x128xf32, #tpu.memory_space<vmem>>, vector<1x8x128xf32>
    %197 = vector.shape_cast %196 : vector<1x8x128xf32> to vector<8x128xf32>
    %198 = vector.shape_cast %192 : vector<8x128xf32> to vector<1x8x128xf32>
    tpu.vector_store %arg2[%195, %c0_92, %c0_93], %198 {strides = array<i32>} : memref<8x8x128xf32, #tpu.memory_space<vmem>>, vector<1x8x128xf32>,
    %c5_i32 = arith.constant 5 : i32
    %c0_94 = arith.constant 0 : index
    %c0_95 = arith.constant 0 : index
    %199 = vector.load %arg5[%c0_94, %c0_95] : memref<8x128xf32, #tpu.memory_space<vmem>>, vector<8x128xf32>
    %200 = arith.index_cast %c5_i32 : i32 to index
    %c0_96 = arith.constant 0 : index
    %c0_97 = arith.constant 0 : index
    %201 = vector.load %arg0[%200, %c0_96, %c0_97] : memref<8x8x512xf32, #tpu.memory_space<vmem>>, vector<1x8x512xf32>
    %202 = vector.shape_cast %201 : vector<1x8x512xf32> to vector<8x512xf32>
    %c0_98 = arith.constant 0 : index
    %c0_99 = arith.constant 0 : index
    %203 = vector.load %arg1[%c0_98, %c0_99] : memref<128x512xf32, #tpu.memory_space<vmem>>, vector<128x512xf32>
    %cst_100 = arith.constant dense<0.000000e+00> : vector<8x512xf32>
    %204 = tpu.matmul %199, %203, %cst_100 {dimension_numbers = #tpu.dot_dimension_numbers<[1], [0], [0], [1], [0, 0, 1, 1], [], []>} : vector<8x128xf32>, vector<128x512xf32>, vector<8x512xf32> -> vector<8x512xf32>
    %205 = arith.addf %202, %204 : vector<8x512xf32>
    %206 = vector.extract_strided_slice %205 {offsets = [0, 0], sizes = [8, 128], strides = [1, 1]} : vector<8x512xf32> to vector<8x128xf32>
    %207 = arith.negf %206 : vector<8x128xf32>
    %208 = math.exp %207 : vector<8x128xf32>
    %cst_101 = arith.constant 1.000000e+00 : f32
    %209 = vector.broadcast %cst_101 : f32 to vector<8x128xf32>
    %210 = arith.addf %209, %208 : vector<8x128xf32>
    %211 = arith.divf %209, %210 : vector<8x128xf32>
    %212 = vector.extract_strided_slice %205 {offsets = [0, 128], sizes = [8, 128], strides = [1, 1]} : vector<8x512xf32> to vector<8x128xf32>
    %213 = arith.negf %212 : vector<8x128xf32>
    %214 = math.exp %213 : vector<8x128xf32>
    %cst_102 = arith.constant 1.000000e+00 : f32
    %215 = vector.broadcast %cst_102 : f32 to vector<8x128xf32>
    %216 = arith.addf %215, %214 : vector<8x128xf32>
    %217 = arith.divf %215, %216 : vector<8x128xf32>
    %218 = vector.extract_strided_slice %205 {offsets = [0, 256], sizes = [8, 128], strides = [1, 1]} : vector<8x512xf32> to vector<8x128xf32>
    %219 = math.tanh %218 : vector<8x128xf32>
    %220 = vector.extract_strided_slice %205 {offsets = [0, 384], sizes = [8, 128], strides = [1, 1]} : vector<8x512xf32> to vector<8x128xf32>
    %221 = arith.negf %220 : vector<8x128xf32>
    %222 = math.exp %221 : vector<8x128xf32>
    %cst_103 = arith.constant 1.000000e+00 : f32
    %223 = vector.broadcast %cst_103 : f32 to vector<8x128xf32>
    %224 = arith.addf %223, %222 : vector<8x128xf32>
    %225 = arith.divf %223, %224 : vector<8x128xf32>
    %c0_104 = arith.constant 0 : index
    %c0_105 = arith.constant 0 : index
    %226 = vector.load %arg6[%c0_104, %c0_105] : memref<8x128xf32, #tpu.memory_space<vmem>>, vector<8x128xf32>
    %227 = arith.mulf %217, %226 : vector<8x128xf32>
    %228 = arith.mulf %211, %219 : vector<8x128xf32>
    %229 = arith.addf %227, %228 : vector<8x128xf32>
    %230 = math.tanh %229 : vector<8x128xf32>
    %231 = arith.mulf %225, %230 : vector<8x128xf32>
    %c0_106 = arith.constant 0 : index
    %c0_107 = arith.constant 0 : index
    %232 = vector.load %arg6[%c0_106, %c0_107] : memref<8x128xf32, #tpu.memory_space<vmem>>, vector<8x128xf32>
    tpu.vector_store %arg6[%c0_106, %c0_107], %229 {strides = array<i32>} : memref<8x128xf32, #tpu.memory_space<vmem>>, vector<8x128xf32>,
    %c0_108 = arith.constant 0 : index
    %c0_109 = arith.constant 0 : index
    %233 = vector.load %arg5[%c0_108, %c0_109] : memref<8x128xf32, #tpu.memory_space<vmem>>, vector<8x128xf32>
    tpu.vector_store %arg5[%c0_108, %c0_109], %231 {strides = array<i32>} : memref<8x128xf32, #tpu.memory_space<vmem>>, vector<8x128xf32>,
    %234 = arith.index_cast %c5_i32 : i32 to index
    %c0_110 = arith.constant 0 : index
    %c0_111 = arith.constant 0 : index
    %235 = vector.load %arg2[%234, %c0_110, %c0_111] : memref<8x8x128xf32, #tpu.memory_space<vmem>>, vector<1x8x128xf32>
    %236 = vector.shape_cast %235 : vector<1x8x128xf32> to vector<8x128xf32>
    %237 = vector.shape_cast %231 : vector<8x128xf32> to vector<1x8x128xf32>
    tpu.vector_store %arg2[%234, %c0_110, %c0_111], %237 {strides = array<i32>} : memref<8x8x128xf32, #tpu.memory_space<vmem>>, vector<1x8x128xf32>,
    %c6_i32 = arith.constant 6 : i32
    %c0_112 = arith.constant 0 : index
    %c0_113 = arith.constant 0 : index
    %238 = vector.load %arg5[%c0_112, %c0_113] : memref<8x128xf32, #tpu.memory_space<vmem>>, vector<8x128xf32>
    %239 = arith.index_cast %c6_i32 : i32 to index
    %c0_114 = arith.constant 0 : index
    %c0_115 = arith.constant 0 : index
    %240 = vector.load %arg0[%239, %c0_114, %c0_115] : memref<8x8x512xf32, #tpu.memory_space<vmem>>, vector<1x8x512xf32>
    %241 = vector.shape_cast %240 : vector<1x8x512xf32> to vector<8x512xf32>
    %c0_116 = arith.constant 0 : index
    %c0_117 = arith.constant 0 : index
    %242 = vector.load %arg1[%c0_116, %c0_117] : memref<128x512xf32, #tpu.memory_space<vmem>>, vector<128x512xf32>
    %cst_118 = arith.constant dense<0.000000e+00> : vector<8x512xf32>
    %243 = tpu.matmul %238, %242, %cst_118 {dimension_numbers = #tpu.dot_dimension_numbers<[1], [0], [0], [1], [0, 0, 1, 1], [], []>} : vector<8x128xf32>, vector<128x512xf32>, vector<8x512xf32> -> vector<8x512xf32>
    %244 = arith.addf %241, %243 : vector<8x512xf32>
    %245 = vector.extract_strided_slice %244 {offsets = [0, 0], sizes = [8, 128], strides = [1, 1]} : vector<8x512xf32> to vector<8x128xf32>
    %246 = arith.negf %245 : vector<8x128xf32>
    %247 = math.exp %246 : vector<8x128xf32>
    %cst_119 = arith.constant 1.000000e+00 : f32
    %248 = vector.broadcast %cst_119 : f32 to vector<8x128xf32>
    %249 = arith.addf %248, %247 : vector<8x128xf32>
    %250 = arith.divf %248, %249 : vector<8x128xf32>
    %251 = vector.extract_strided_slice %244 {offsets = [0, 128], sizes = [8, 128], strides = [1, 1]} : vector<8x512xf32> to vector<8x128xf32>
    %252 = arith.negf %251 : vector<8x128xf32>
    %253 = math.exp %252 : vector<8x128xf32>
    %cst_120 = arith.constant 1.000000e+00 : f32
    %254 = vector.broadcast %cst_120 : f32 to vector<8x128xf32>
    %255 = arith.addf %254, %253 : vector<8x128xf32>
    %256 = arith.divf %254, %255 : vector<8x128xf32>
    %257 = vector.extract_strided_slice %244 {offsets = [0, 256], sizes = [8, 128], strides = [1, 1]} : vector<8x512xf32> to vector<8x128xf32>
    %258 = math.tanh %257 : vector<8x128xf32>
    %259 = vector.extract_strided_slice %244 {offsets = [0, 384], sizes = [8, 128], strides = [1, 1]} : vector<8x512xf32> to vector<8x128xf32>
    %260 = arith.negf %259 : vector<8x128xf32>
    %261 = math.exp %260 : vector<8x128xf32>
    %cst_121 = arith.constant 1.000000e+00 : f32
    %262 = vector.broadcast %cst_121 : f32 to vector<8x128xf32>
    %263 = arith.addf %262, %261 : vector<8x128xf32>
    %264 = arith.divf %262, %263 : vector<8x128xf32>
    %c0_122 = arith.constant 0 : index
    %c0_123 = arith.constant 0 : index
    %265 = vector.load %arg6[%c0_122, %c0_123] : memref<8x128xf32, #tpu.memory_space<vmem>>, vector<8x128xf32>
    %266 = arith.mulf %256, %265 : vector<8x128xf32>
    %267 = arith.mulf %250, %258 : vector<8x128xf32>
    %268 = arith.addf %266, %267 : vector<8x128xf32>
    %269 = math.tanh %268 : vector<8x128xf32>
    %270 = arith.mulf %264, %269 : vector<8x128xf32>
    %c0_124 = arith.constant 0 : index
    %c0_125 = arith.constant 0 : index
    %271 = vector.load %arg6[%c0_124, %c0_125] : memref<8x128xf32, #tpu.memory_space<vmem>>, vector<8x128xf32>
    tpu.vector_store %arg6[%c0_124, %c0_125], %268 {strides = array<i32>} : memref<8x128xf32, #tpu.memory_space<vmem>>, vector<8x128xf32>,
    %c0_126 = arith.constant 0 : index
    %c0_127 = arith.constant 0 : index
    %272 = vector.load %arg5[%c0_126, %c0_127] : memref<8x128xf32, #tpu.memory_space<vmem>>, vector<8x128xf32>
    tpu.vector_store %arg5[%c0_126, %c0_127], %270 {strides = array<i32>} : memref<8x128xf32, #tpu.memory_space<vmem>>, vector<8x128xf32>,
    %273 = arith.index_cast %c6_i32 : i32 to index
    %c0_128 = arith.constant 0 : index
    %c0_129 = arith.constant 0 : index
    %274 = vector.load %arg2[%273, %c0_128, %c0_129] : memref<8x8x128xf32, #tpu.memory_space<vmem>>, vector<1x8x128xf32>
    %275 = vector.shape_cast %274 : vector<1x8x128xf32> to vector<8x128xf32>
    %276 = vector.shape_cast %270 : vector<8x128xf32> to vector<1x8x128xf32>
    tpu.vector_store %arg2[%273, %c0_128, %c0_129], %276 {strides = array<i32>} : memref<8x8x128xf32, #tpu.memory_space<vmem>>, vector<1x8x128xf32>,
    %c7_i32 = arith.constant 7 : i32
    %c0_130 = arith.constant 0 : index
    %c0_131 = arith.constant 0 : index
    %277 = vector.load %arg5[%c0_130, %c0_131] : memref<8x128xf32, #tpu.memory_space<vmem>>, vector<8x128xf32>
    %278 = arith.index_cast %c7_i32 : i32 to index
    %c0_132 = arith.constant 0 : index
    %c0_133 = arith.constant 0 : index
    %279 = vector.load %arg0[%278, %c0_132, %c0_133] : memref<8x8x512xf32, #tpu.memory_space<vmem>>, vector<1x8x512xf32>
    %280 = vector.shape_cast %279 : vector<1x8x512xf32> to vector<8x512xf32>
    %c0_134 = arith.constant 0 : index
    %c0_135 = arith.constant 0 : index
    %281 = vector.load %arg1[%c0_134, %c0_135] : memref<128x512xf32, #tpu.memory_space<vmem>>, vector<128x512xf32>
    %cst_136 = arith.constant dense<0.000000e+00> : vector<8x512xf32>
    %282 = tpu.matmul %277, %281, %cst_136 {dimension_numbers = #tpu.dot_dimension_numbers<[1], [0], [0], [1], [0, 0, 1, 1], [], []>} : vector<8x128xf32>, vector<128x512xf32>, vector<8x512xf32> -> vector<8x512xf32>
    %283 = arith.addf %280, %282 : vector<8x512xf32>
    %284 = vector.extract_strided_slice %283 {offsets = [0, 0], sizes = [8, 128], strides = [1, 1]} : vector<8x512xf32> to vector<8x128xf32>
    %285 = arith.negf %284 : vector<8x128xf32>
    %286 = math.exp %285 : vector<8x128xf32>
    %cst_137 = arith.constant 1.000000e+00 : f32
    %287 = vector.broadcast %cst_137 : f32 to vector<8x128xf32>
    %288 = arith.addf %287, %286 : vector<8x128xf32>
    %289 = arith.divf %287, %288 : vector<8x128xf32>
    %290 = vector.extract_strided_slice %283 {offsets = [0, 128], sizes = [8, 128], strides = [1, 1]} : vector<8x512xf32> to vector<8x128xf32>
    %291 = arith.negf %290 : vector<8x128xf32>
    %292 = math.exp %291 : vector<8x128xf32>
    %cst_138 = arith.constant 1.000000e+00 : f32
    %293 = vector.broadcast %cst_138 : f32 to vector<8x128xf32>
    %294 = arith.addf %293, %292 : vector<8x128xf32>
    %295 = arith.divf %293, %294 : vector<8x128xf32>
    %296 = vector.extract_strided_slice %283 {offsets = [0, 256], sizes = [8, 128], strides = [1, 1]} : vector<8x512xf32> to vector<8x128xf32>
    %297 = math.tanh %296 : vector<8x128xf32>
    %298 = vector.extract_strided_slice %283 {offsets = [0, 384], sizes = [8, 128], strides = [1, 1]} : vector<8x512xf32> to vector<8x128xf32>
    %299 = arith.negf %298 : vector<8x128xf32>
    %300 = math.exp %299 : vector<8x128xf32>
    %cst_139 = arith.constant 1.000000e+00 : f32
    %301 = vector.broadcast %cst_139 : f32 to vector<8x128xf32>
    %302 = arith.addf %301, %300 : vector<8x128xf32>
    %303 = arith.divf %301, %302 : vector<8x128xf32>
    %c0_140 = arith.constant 0 : index
    %c0_141 = arith.constant 0 : index
    %304 = vector.load %arg6[%c0_140, %c0_141] : memref<8x128xf32, #tpu.memory_space<vmem>>, vector<8x128xf32>
    %305 = arith.mulf %295, %304 : vector<8x128xf32>
    %306 = arith.mulf %289, %297 : vector<8x128xf32>
    %307 = arith.addf %305, %306 : vector<8x128xf32>
    %308 = math.tanh %307 : vector<8x128xf32>
    %309 = arith.mulf %303, %308 : vector<8x128xf32>
    %c0_142 = arith.constant 0 : index
    %c0_143 = arith.constant 0 : index
    %310 = vector.load %arg6[%c0_142, %c0_143] : memref<8x128xf32, #tpu.memory_space<vmem>>, vector<8x128xf32>
    tpu.vector_store %arg6[%c0_142, %c0_143], %307 {strides = array<i32>} : memref<8x128xf32, #tpu.memory_space<vmem>>, vector<8x128xf32>,
    %c0_144 = arith.constant 0 : index
    %c0_145 = arith.constant 0 : index
    %311 = vector.load %arg5[%c0_144, %c0_145] : memref<8x128xf32, #tpu.memory_space<vmem>>, vector<8x128xf32>
    tpu.vector_store %arg5[%c0_144, %c0_145], %309 {strides = array<i32>} : memref<8x128xf32, #tpu.memory_space<vmem>>, vector<8x128xf32>,
    %312 = arith.index_cast %c7_i32 : i32 to index
    %c0_146 = arith.constant 0 : index
    %c0_147 = arith.constant 0 : index
    %313 = vector.load %arg2[%312, %c0_146, %c0_147] : memref<8x8x128xf32, #tpu.memory_space<vmem>>, vector<1x8x128xf32>
    %314 = vector.shape_cast %313 : vector<1x8x128xf32> to vector<8x128xf32>
    %315 = vector.shape_cast %309 : vector<8x128xf32> to vector<1x8x128xf32>
    tpu.vector_store %arg2[%312, %c0_146, %c0_147], %315 {strides = array<i32>} : memref<8x8x128xf32, #tpu.memory_space<vmem>>, vector<1x8x128xf32>,
    %c8_i32 = arith.constant 8 : i32
    %c0_148 = arith.constant 0 : index
    %c0_149 = arith.constant 0 : index
    %316 = vector.load %arg5[%c0_148, %c0_149] : memref<8x128xf32, #tpu.memory_space<vmem>>, vector<8x128xf32>
    %c0_150 = arith.constant 0 : index
    %c0_151 = arith.constant 0 : index
    %317 = vector.load %arg3[%c0_150, %c0_151] : memref<8x128xf32, #tpu.memory_space<vmem>>, vector<8x128xf32>
    tpu.vector_store %arg3[%c0_150, %c0_151], %316 {strides = array<i32>} : memref<8x128xf32, #tpu.memory_space<vmem>>, vector<8x128xf32>,
    %c0_152 = arith.constant 0 : index
    %c0_153 = arith.constant 0 : index
    %318 = vector.load %arg6[%c0_152, %c0_153] : memref<8x128xf32, #tpu.memory_space<vmem>>, vector<8x128xf32>
    %c0_154 = arith.constant 0 : index
    %c0_155 = arith.constant 0 : index
    %319 = vector.load %arg4[%c0_154, %c0_155] : memref<8x128xf32, #tpu.memory_space<vmem>>, vector<8x128xf32>
    tpu.vector_store %arg4[%c0_154, %c0_155], %318 {strides = array<i32>} : memref<8x128xf32, #tpu.memory_space<vmem>>, vector<8x128xf32>,
    return
  }
}

module attributes {stable_mosaic.version = 11 : i64} {
  func.func @_matmul_bias_kernel(%arg0: i32, %arg1: i32, %arg2: memref<16x128xf32, #tpu.memory_space<vmem>>, %arg3: memref<128x256xf32, #tpu.memory_space<vmem>>, %arg4: memref<1x256xf32, #tpu.memory_space<vmem>>, %arg5: memref<16x256xf32, #tpu.memory_space<vmem>>) attributes {dimension_semantics = [#tpu.dimension_semantics<parallel>, #tpu.dimension_semantics<parallel>], iteration_bounds = array<i64: 1, 1>, scalar_prefetch = 0 : i64, scratch_operands = 0 : i64, tpu.core_type = #tpu.core_type<tc>, window_params = [{transform_indices = @transform_0, window_bounds = array<i64: 16, 128>}, {transform_indices = @transform_1, window_bounds = array<i64: 128, 256>}, {transform_indices = @transform_2, window_bounds = array<i64: 1, 256>}, {transform_indices = @transform_3, window_bounds = array<i64: 16, 256>}]} {
    %c0 = arith.constant 0 : index
    %c0_0 = arith.constant 0 : index
    %0 = vector.load %arg2[%c0, %c0_0] : memref<16x128xf32, #tpu.memory_space<vmem>>, vector<16x128xf32>
    %c0_1 = arith.constant 0 : index
    %c0_2 = arith.constant 0 : index
    %1 = vector.load %arg3[%c0_1, %c0_2] : memref<128x256xf32, #tpu.memory_space<vmem>>, vector<128x256xf32>
    %cst = arith.constant dense<0.000000e+00> : vector<16x256xf32>
    %2 = tpu.matmul %0, %1, %cst {dimension_numbers = #tpu.dot_dimension_numbers<[1], [0], [0], [1], [0, 0, 1, 1], [], []>} : vector<16x128xf32>, vector<128x256xf32>, vector<16x256xf32> -> vector<16x256xf32>
    %c0_3 = arith.constant 0 : index
    %c0_4 = arith.constant 0 : index
    %3 = vector.load %arg4[%c0_3, %c0_4] : memref<1x256xf32, #tpu.memory_space<vmem>>, vector<1x256xf32>
    %4 = vector.broadcast %3 : vector<1x256xf32> to vector<16x256xf32>
    %5 = arith.addf %2, %4 : vector<16x256xf32>
    %c0_5 = arith.constant 0 : index
    %c0_6 = arith.constant 0 : index
    %6 = vector.load %arg5[%c0_5, %c0_6] : memref<16x256xf32, #tpu.memory_space<vmem>>, vector<16x256xf32>
    tpu.vector_store %arg5[%c0_5, %c0_6], %5 {strides = array<i32>} : memref<16x256xf32, #tpu.memory_space<vmem>>, vector<16x256xf32>,
    return
  }
  func.func @transform_0(%arg0: i32, %arg1: i32) -> (i32, i32) {
    %c0_i32 = arith.constant 0 : i32
    %c0_i32_0 = arith.constant 0 : i32
    return %arg0, %c0_i32 : i32, i32
  }
  func.func @transform_1(%arg0: i32, %arg1: i32) -> (i32, i32) {
    %c0_i32 = arith.constant 0 : i32
    %c0_i32_0 = arith.constant 0 : i32
    return %c0_i32, %arg1 : i32, i32
  }
  func.func @transform_2(%arg0: i32, %arg1: i32) -> (i32, i32) {
    %c0_i32 = arith.constant 0 : i32
    %c0_i32_0 = arith.constant 0 : i32
    return %c0_i32, %arg1 : i32, i32
  }
  func.func @transform_3(%arg0: i32, %arg1: i32) -> (i32, i32) {
    %c0_i32 = arith.constant 0 : i32
    return %arg0, %arg1 : i32, i32
  }
}

</mosaic_0001>

<bundles_post_ra>
// kernel: word_completion_forward.5
= control target key start
LH: loop header
LB: loop body
LE: loop exit
PB: predicated region body
PF: predicated region fallthrough
CT: control target
= control target key end

     0   :  { %v234_v7 = vmov 0.0   ;;  %s375_s0 = inlined_call_operand.vmem [shape: f32[16,128], index: 0, kind: input, shape index: {}]   ;;  %s376_s1 = inlined_call_operand.vmem [shape: f32[128,256], index: 1, kind: input, shape index: {}]   ;;  %s377_s2 = inlined_call_operand.vmem [shape: f32[1,256], index: 2, kind: input, shape index: {}]   ;;  %s378_s3 = inlined_call_operand.hbm [shape: f32[16,256], index: 3, kind: output, shape index: {}]  }
   0x1   :  { %v18_v0 = vld [vmem:[%s376_s1 + $0x8] sm:$0xff]  ;;  %v20_v1 = vld [vmem:[%s376_s1 + $0x18] sm:$0xff]  ;;  %v17_v2 = vld [vmem:[%s376_s1] sm:$0xff]  ;;  %125 = vmatprep.mubr.f32.mxu0 %v234_v7  ;;  %131 = vmatprep.mubr.f32.mxu1 %v234_v7 }
   0x2   :  { %v158_v3 = vpack.c.bf16 %v20_v1, %v18_v0  ;;  %v19_v4 = vld [vmem:[%s376_s1 + $0x10] sm:$0xff]  ;;  %v22_v5 = vld [vmem:[%s376_s1 + $0x28] sm:$0xff]  ;;  %v24_v6 = vld [vmem:[%s376_s1 + $0x38] sm:$0xff] }
   0x3   :  { %v160_v8 = vpack.c.bf16 %v19_v4, %v17_v2  ;;  %v162_v9 = vpack.c.bf16 %v24_v6, %v22_v5  ;;  %v21_v10 = vld [vmem:[%s376_s1 + $0x20] sm:$0xff]  ;;  %v23_v11 = vld [vmem:[%s376_s1 + $0x30] sm:$0xff]  ;;  %v26_v12 = vld [vmem:[%s376_s1 + $0x48] sm:$0xff] }
   0x4   :  { %159 = vmatprep.subr.bf16.mxu0 %v158_v3  ;;  %190 = vmatprep.subr.bf16.mxu1 %v158_v3  ;;  %v28_v13 = vld [vmem:[%s376_s1 + $0x58] sm:$0xff]  ;;  %v164_v14 = vpack.c.bf16 %v23_v11, %v21_v10  ;;  %v25_v16 = vld [vmem:[%s376_s1 + $0x40] sm:$0xff]  ;;  %v27_v17 = vld [vmem:[%s376_s1 + $0x50] sm:$0xff] }
   0x5   :  { %161 = vmatpush1.bf16.msra.mxu0 %v160_v8  ;;  %198 = vmatpush1.bf16.msra.mxu1 %v160_v8  ;;  %v166_v15 = vpack.c.bf16 %v28_v13, %v26_v12  ;;  %v30_v18 = vld [vmem:[%s376_s1 + $0x68] sm:$0xff]  ;;  %v32_v19 = vld [vmem:[%s376_s1 + $0x78] sm:$0xff]  ;;  %v168_v20 = vpack.c.bf16 %v27_v17, %v25_v16  ;;  %v29_v22 = vld [vmem:[%s376_s1 + $0x60] sm:$0xff] }
   0x6   :  { %163 = vmatprep.subr.bf16.mxu0 %v162_v9  ;;  %191 = vmatprep.subr.bf16.mxu1 %v162_v9  ;;  %v170_v21 = vpack.c.bf16 %v32_v19, %v30_v18  ;;  %v31_v23 = vld [vmem:[%s376_s1 + $0x70] sm:$0xff]  ;;  %v34_v24 = vld [vmem:[%s376_s1 + $0x88] sm:$0xff]  ;;  %v36_v25 = vld [vmem:[%s376_s1 + $0x98] sm:$0xff] }
   0x9   :  { %165 = vmatpush1.bf16.msra.mxu0 %v164_v14  ;;  %199 = vmatpush1.bf16.msra.mxu1 %v164_v14 }
   0xa   :  { %167 = vmatprep.subr.bf16.mxu0 %v166_v15  ;;  %192 = vmatprep.subr.bf16.mxu1 %v166_v15 }
   0xb   :  { %8 = vsyncpa [#allocation3], 0  ;;  %v172_v26 = vpack.c.bf16 %v31_v23, %v29_v22  ;;  %v174_v27 = vpack.c.bf16 %v36_v25, %v34_v24  ;;  %v33_v28 = vld [vmem:[%s376_s1 + $0x80] sm:$0xff]  ;;  %v35_v29 = vld [vmem:[%s376_s1 + $0x90] sm:$0xff]  ;;  %v51_v51 = vlaneseq  ;;  %s235_s27 = smov [#allocation2]  }
   0xc   :  { %v38_v30 = vld [vmem:[%s376_s1 + $0xa8] sm:$0xff]  ;;  %v40_v31 = vld [vmem:[%s376_s1 + $0xb8] sm:$0xff]  ;;  %v176_v32 = vpack.c.bf16 %v35_v29, %v33_v28  ;;  %v37_v34 = vld [vmem:[%s376_s1 + $0xa0] sm:$0xff]  ;;  %s147_s28 = sshll.u32 %s235_s27, 4  ;;  %s148_s28 = int_to_ptr.vmem [resolvable:$true] %s147_s28 }
   0xd   :  { %169 = vmatpush1.bf16.msra.mxu0 %v168_v20  ;;  %200 = vmatpush1.bf16.msra.mxu1 %v168_v20  ;;  %v178_v33 = vpack.c.bf16 %v40_v31, %v38_v30  ;;  %v39_v35 = vld [vmem:[%s376_s1 + $0xb0] sm:$0xff]  ;;  %v42_v36 = vld [vmem:[%s376_s1 + $0xc8] sm:$0xff]  ;;  %v44_v37 = vld [vmem:[%s376_s1 + $0xd8] sm:$0xff]  ;;  %v52_v52 = vshrl.u32 %v51_v51, 7  ;;  %p215_p1 = scmp.lt.s32.totalorder %s148_s28, %s148_s28 }
   0xe   :  { %171 = vmatprep.subr.bf16.mxu0 %v170_v21  ;;  %193 = vmatprep.subr.bf16.mxu1 %v170_v21  ;;  %v180_v38 = vpack.c.bf16 %v39_v35, %v37_v34  ;;  %v182_v39 = vpack.c.bf16 %v44_v37, %v42_v36  ;;  %v41_v40 = vld [vmem:[%s376_s1 + $0xc0] sm:$0xff]  ;;  %v43_v41 = vld [vmem:[%s376_s1 + $0xd0] sm:$0xff]  ;;  %v46_v42 = vld [vmem:[%s376_s1 + $0xe8] sm:$0xff] }
   0xf   :  { %v48_v43 = vld [vmem:[%s376_s1 + $0xf8] sm:$0xff]  ;;  %v184_v44 = vpack.c.bf16 %v43_v41, %v41_v40  ;;  %v45_v46 = vld [vmem:[%s376_s1 + $0xe0] sm:$0xff]  ;;  %v47_v47 = vld [vmem:[%s376_s1 + $0xf0] sm:$0xff]  ;;  %v53_v53 = vsub.s32 0, %v52_v52  ;;  %v57_v55 = vsub.s32 1, %v52_v52 }
  0x10   :  { %v186_v45 = vpack.c.bf16 %v48_v43, %v46_v42  ;;  %v188_v48 = vpack.c.bf16 %v47_v47, %v45_v46  ;;  %v15_v49 = vld [vmem:[%s375_s0] sm:$0xff]  ;;  %v16_v50 = vld [vmem:[%s375_s0 + $0x8] sm:$0xff]  ;;  %s210_s0 = scalar_lea.vmem %s148_s28, 512 }
  0x11   :  { %173 = vmatpush1.bf16.msra.mxu0 %v172_v26  ;;  %201 = vmatpush1.bf16.msra.mxu1 %v172_v26  ;;  %v49_v54 = vld [vmem:[%s377_s2] sm:$0x3]  ;;  %p211_p0 = scmp.ne.s32.totalorder %s148_s28, %s210_s0  ;;  %p216_p2 = scmp.lt.s32.totalorder %s210_s0, %s210_s0 }
  0x12   :  { %175 = vmatprep.subr.bf16.mxu0 %v174_v27  ;;  %194 = vmatprep.subr.bf16.mxu1 %v174_v27  ;;  %v54_v56 = vrot.slane %v49_v54, %v53_v53  ;;  %v58_v57 = vrot.slane %v49_v54, %v57_v55 }
  0x13   :  { %p217_p3 = por %p216_p2, %p215_p1 }
  0x15   :  { %177 = vmatpush1.bf16.msra.mxu0 %v176_v32  ;;  %202 = vmatpush1.bf16.msra.mxu1 %v176_v32  ;;  %p218_p4 = pnand %p217_p3, %p211_p0 }
  0x16   :  { %179 = vmatprep.subr.bf16.mxu0 %v178_v33  ;;  %195 = vmatprep.subr.bf16.mxu1 %v178_v33 }
  0x19   :  { %181 = vmatpush1.bf16.msra.mxu0 %v180_v38  ;;  %203 = vmatpush1.bf16.msra.mxu1 %v180_v38 }
  0x1a   :  { %183 = vmatprep.subr.bf16.mxu0 %v182_v39  ;;  %196 = vmatprep.subr.bf16.mxu1 %v182_v39 }
  0x1d   :  { %185 = vmatpush1.bf16.msra.mxu0 %v184_v44  ;;  %204 = vmatpush1.bf16.msra.mxu1 %v184_v44 }
  0x1e   :  { %187 = vmatprep.subr.bf16.mxu0 %v186_v45  ;;  %197 = vmatprep.subr.bf16.mxu1 %v186_v45 }
  0x21   :  { %189 = vmatpush1.bf16.msra.mxu0 %v188_v48  ;;  %205 = vmatpush1.bf16.msra.mxu1 %v188_v48 }
  0x24   :  { %126 = vmatmul.mubr.f32.vlgmr.msra.gmra.mrb[0].mxu0 %v15_v49  ;;  %132 = vmatmul.mubr.f32.vlgmr.msra.gmra.mrb[0].mxu1 %v16_v50 }
  0xf7   :  { %v127_v58 = vpop.f32.mrb[0].mxu0  ;;  %v133_v59 = vpop.f32.mrb[0].mxu1 }
  0xf8   :  { %v128_v60 = vadd.f32 %v127_v58, %v54_v56  ;;  %v134_v61 = vadd.f32 %v133_v59, %v54_v56  ;;  %v129_v62 = vpop.f32.mrb[1].mxu0  ;;  %v135_v63 = vpop.f32.mrb[1].mxu1 }
  0xf9   :  { %v130_v0 = vadd.f32 %v129_v62, %v58_v57  ;;  %v136_v1 = vadd.f32 %v135_v63, %v58_v57 }
  0xfa   :  { %138 = vst [vmem:[#allocation2] sm:$0xff] %v128_v60  ;;  %140 = vst [vmem:[#allocation2 + $0x10] sm:$0xff] %v134_v61 }
  0xfb   :  { %139 = vst [vmem:[#allocation2 + $0x8] sm:$0xff] %v130_v0  ;;  %141 = vst [vmem:[#allocation2 + $0x18] sm:$0xff] %v136_v1 }
  0xfc   :  { %221 = shalt.err (!%p218_p4)
}
  0xfd   :  { %s222_s30 = scalar_lea.hbm %s378_s3, 512 }
  0xfe   :  { %p223_p5 = scmp.ne.s32.totalorder %s378_s3, %s222_s30  ;;  %p226_p6 = scmp.lt.u32.totalorder %s222_s30, %s378_s3 }
 0x100   :  { %p228_p7 = pnand %p226_p6, %p223_p5 }
 0x102   :  { %231 = shalt.err (!%p228_p7)
}
 0x103   :  { %s236_s8 = smov 256   ;;  %s237_s9 = smov 16  }
 0x104   :  { %153 = dma.vmem_to_hbm [thread:$0]  %s148_s28, 512, %s378_s3, [#allocation3], %s236_s8, %s236_s8, %s237_s9  }
 0x105   :  { %232 = dma.done.wait [#allocation3], 512  }
 0x106   :  { %233 = vsyncadd [#allocation3], 4294966784 }
 0x107   :  { %157 = vsyncpa [#allocation3], 1 }

// kernel: word_completion_forward.3
= control target key start
LH: loop header
LB: loop body
LE: loop exit
PB: predicated region body
PF: predicated region fallthrough
CT: control target
= control target key end

     0   :  { %v380_v3 = vmov 0.0   ;;  %vm60_vm0 = vcmask 261120   ;;  %v40_v33 = vlaneseq  ;;  %s644_s1 = inlined_call_operand.vmem [shape: f32[32,512], index: 1, kind: input, shape index: {}]   ;;  %s645_s0 = inlined_call_operand.vmem [shape: f32[64,32], index: 0, kind: input, shape index: {}]   ;;  %s646_s2 = inlined_call_operand.vmem [shape: f32[1,512], index: 2, kind: input, shape index: {}]   ;;  %s647_s3 = inlined_call_operand.vmem [shape: f32[64,512], index: 3, kind: output, shape index: {}]  }
   0x1   :  { %v23_v0 = vld [vmem:[%s644_s1 + $0x8] sm:$0xff]  ;;  %v25_v2 = vld [vmem:[%s644_s1 + $0x18] sm:$0xff]  ;;  %149 = vmatprep.mubr.f32.mxu0 %v380_v3  ;;  %262 = vmatprep.mubr.f32.mxu1 %v380_v3  ;;  %v22_v6 = vld [vmem:[%s644_s1] sm:$0xff] }
   0x2   :  { %v27_v1 = vld [vmem:[%s644_s1 + $0x28] sm:$0xff]  ;;  %v29_v5 = vld [vmem:[%s644_s1 + $0x38] sm:$0xff]  ;;  %v26_v7 = vld [vmem:[%s644_s1 + $0x20] sm:$0xff]  ;;  %v41_v34 = vshrl.u32 %v40_v33, 7 }
   0x3   :  { %v363_v4 = vpack.c.bf16 %v27_v1, %v23_v0  ;;  %v371_v8 = vpack.c.bf16 %v29_v5, %v25_v2  ;;  %v365_v9 = vpack.c.bf16 %v26_v7, %v22_v6  ;;  %v24_v10 = vld [vmem:[%s644_s1 + $0x10] sm:$0xff]  ;;  %v31_v12 = vld [vmem:[%s644_s1 + $0x48] sm:$0xff]  ;;  %v33_v15 = vld [vmem:[%s644_s1 + $0x58] sm:$0xff] }
   0x4   :  { %v28_v11 = vld [vmem:[%s644_s1 + $0x30] sm:$0xff]  ;;  %v35_v14 = vld [vmem:[%s644_s1 + $0x68] sm:$0xff]  ;;  %v37_v16 = vld [vmem:[%s644_s1 + $0x78] sm:$0xff]  ;;  %v42_v35 = vsub.s32 0, %v41_v34  ;;  %v50_v37 = vsub.s32 2, %v41_v34  ;;  %v46_v38 = vsub.s32 1, %v41_v34 }
   0x5   :  { %364 = vmatprep.subr.bf16.mxu0 %v363_v4  ;;  %v373_v13 = vpack.c.bf16 %v28_v11, %v24_v10  ;;  %372 = vmatprep.subr.bf16.mxu1 %v371_v8  ;;  %v367_v17 = vpack.c.bf16 %v35_v14, %v31_v12  ;;  %v375_v18 = vpack.c.bf16 %v37_v16, %v33_v15  ;;  %v30_v19 = vld [vmem:[%s644_s1 + $0x40] sm:$0xff]  ;;  %v32_v21 = vld [vmem:[%s644_s1 + $0x50] sm:$0xff]  ;;  %v15_v26 = vld [vmem:[%s645_s0 + $0x8] sm:$0xff]  ;;  %v54_v39 = vsub.s32 3, %v41_v34 }
   0x6   :  { %366 = vmatpush1.bf16.msra.mxu0 %v365_v9  ;;  %v34_v20 = vld [vmem:[%s644_s1 + $0x60] sm:$0xff]  ;;  %v36_v23 = vld [vmem:[%s644_s1 + $0x70] sm:$0xff]  ;;  %v17_v28 = vld [vmem:[%s645_s0 + $0x18] sm:$0xff] }
   0x7   :  { %374 = vmatpush1.bf16.msra.mxu1 %v373_v13  ;;  %v369_v22 = vpack.c.bf16 %v34_v20, %v30_v19  ;;  %368 = vmatprep.subr.bf16.mxu0 %v367_v17  ;;  %v377_v24 = vpack.c.bf16 %v36_v23, %v32_v21  ;;  %v14_v25 = vld [vmem:[%s645_s0] sm:$0xff]  ;;  %v16_v27 = vld [vmem:[%s645_s0 + $0x10] sm:$0xff]  ;;  %v19_v30 = vld [vmem:[%s645_s0 + $0x28] sm:$0xff] }
   0x8   :  { %376 = vmatprep.subr.bf16.mxu1 %v375_v18  ;;  %v18_v29 = vld [vmem:[%s645_s0 + $0x20] sm:$0xff]  ;;  %v20_v31 = vld [vmem:[%s645_s0 + $0x30] sm:$0xff]  ;;  %v21_v32 = vld [vmem:[%s645_s0 + $0x38] sm:$0xff] }
   0x9   :  { %v38_v36 = vld [vmem:[%s646_s2] sm:$0xf] }
   0xa   :  { %370 = vmatpush1.bf16.msra.mxu0 %v369_v22  ;;  %v508_v40 = vrot.slane %v38_v36, %v42_v35  ;;  %v510_v41 = vrot.slane %v38_v36, %v50_v37  ;;  %v512_v42 = vrot.slane %v38_v36, %v46_v38  ;;  %v514_v43 = vrot.slane %v38_v36, %v54_v39 }
   0xb   :  { %378 = vmatpush1.bf16.msra.mxu1 %v377_v24 }
   0xd   :  { %347 = vmatmul.mubr.msk.f32.vlgmr.msra.gmra.mrb[0].mxu0 %vm60_vm0, %v14_v25 }
   0xe   :  { %355 = vmatmul.mubr.msk.f32.vlgmr.msra.gmra.mrb[0].mxu1 %vm60_vm0, %v14_v25  ;;  %155 = vmatprep.mubr.f32.mxu0 %v380_v3 }
   0xf   :  { %268 = vmatprep.mubr.f32.mxu1 %v380_v3 }
  0x11   :  { %348 = vmatmul.mubr.msk.f32.gmra.mrb[2].mxu0 %vm60_vm0, %v15_v26 }
  0x12   :  { %356 = vmatmul.mubr.msk.f32.gmra.mrb[2].mxu1 %vm60_vm0, %v15_v26  ;;  %161 = vmatprep.mubr.f32.mxu0 %v380_v3 }
  0x13   :  { %274 = vmatprep.mubr.f32.mxu1 %v380_v3 }
  0x15   :  { %349 = vmatmul.mubr.msk.f32.gmra.mrb[4].mxu0 %vm60_vm0, %v16_v27 }
  0x16   :  { %357 = vmatmul.mubr.msk.f32.gmra.mrb[4].mxu1 %vm60_vm0, %v16_v27  ;;  %167 = vmatprep.mubr.f32.mxu0 %v380_v3 }
  0x17   :  { %280 = vmatprep.mubr.f32.mxu1 %v380_v3 }
  0x19   :  { %350 = vmatmul.mubr.msk.f32.gmra.mrb[6].mxu0 %vm60_vm0, %v17_v28 }
  0x1a   :  { %358 = vmatmul.mubr.msk.f32.gmra.mrb[6].mxu1 %vm60_vm0, %v17_v28  ;;  %173 = vmatprep.mubr.f32.mxu0 %v380_v3 }
  0x1b   :  { %286 = vmatprep.mubr.f32.mxu1 %v380_v3 }
  0x1d   :  { %351 = vmatmul.mubr.msk.f32.gmra.mrb[8].mxu0 %vm60_vm0, %v18_v29 }
  0x1e   :  { %359 = vmatmul.mubr.msk.f32.gmra.mrb[8].mxu1 %vm60_vm0, %v18_v29  ;;  %179 = vmatprep.mubr.f32.mxu0 %v380_v3 }
  0x1f   :  { %292 = vmatprep.mubr.f32.mxu1 %v380_v3 }
  0x21   :  { %352 = vmatmul.mubr.msk.f32.gmra.mrb[10].mxu0 %vm60_vm0, %v19_v30 }
  0x22   :  { %360 = vmatmul.mubr.msk.f32.gmra.mrb[10].mxu1 %vm60_vm0, %v19_v30  ;;  %185 = vmatprep.mubr.f32.mxu0 %v380_v3 }
  0x23   :  { %298 = vmatprep.mubr.f32.mxu1 %v380_v3 }
  0x25   :  { %353 = vmatmul.mubr.msk.f32.gmra.mrb[12].mxu0 %vm60_vm0, %v20_v31 }
  0x26   :  { %361 = vmatmul.mubr.msk.f32.gmra.mrb[12].mxu1 %vm60_vm0, %v20_v31  ;;  %191 = vmatprep.mubr.f32.mxu0 %v380_v3 }
  0x27   :  { %304 = vmatprep.mubr.f32.mxu1 %v380_v3 }
  0x29   :  { %354 = vmatmul.mubr.msk.f32.gmra.mrb[14].mxu0 %vm60_vm0, %v21_v32 }
  0x2a   :  { %362 = vmatmul.mubr.msk.f32.gmra.mrb[14].mxu1 %vm60_vm0, %v21_v32 }
  0xe0   :  { %v151_v44 = vpop.f32.mrb[0].mxu0 }
  0xe1   :  { %v152_v45 = vadd.f32 %v151_v44, %v508_v40  ;;  %v264_v46 = vpop.f32.mrb[0].mxu1  ;;  %v153_v47 = vpop.f32.mrb[1].mxu0 }
  0xe2   :  { %v265_v48 = vadd.f32 %v264_v46, %v510_v41  ;;  %v154_v49 = vadd.f32 %v153_v47, %v512_v42  ;;  %v266_v50 = vpop.f32.mrb[1].mxu1 }
  0xe3   :  { %311 = vst [vmem:[%s647_s3] sm:$0xff] %v152_v45  ;;  %v267_v51 = vadd.f32 %v266_v50, %v514_v43 }
  0xe4   :  { %313 = vst [vmem:[%s647_s3 + $0x10] sm:$0xff] %v265_v48  ;;  %312 = vst [vmem:[%s647_s3 + $0x8] sm:$0xff] %v154_v49  ;;  %v157_v52 = vpop.f32.mrb[2].mxu0 }
  0xe5   :  { %314 = vst [vmem:[%s647_s3 + $0x18] sm:$0xff] %v267_v51  ;;  %v158_v53 = vadd.f32 %v157_v52, %v508_v40  ;;  %v270_v54 = vpop.f32.mrb[2].mxu1  ;;  %v159_v55 = vpop.f32.mrb[3].mxu0 }
  0xe6   :  { %v271_v56 = vadd.f32 %v270_v54, %v510_v41  ;;  %v160_v57 = vadd.f32 %v159_v55, %v512_v42  ;;  %v272_v58 = vpop.f32.mrb[3].mxu1 }
  0xe7   :  { %315 = vst [vmem:[%s647_s3 + $0x20] sm:$0xff] %v158_v53  ;;  %v273_v59 = vadd.f32 %v272_v58, %v514_v43 }
  0xe8   :  { %317 = vst [vmem:[%s647_s3 + $0x30] sm:$0xff] %v271_v56  ;;  %316 = vst [vmem:[%s647_s3 + $0x28] sm:$0xff] %v160_v57  ;;  %v163_v60 = vpop.f32.mrb[4].mxu0 }
  0xe9   :  { %318 = vst [vmem:[%s647_s3 + $0x38] sm:$0xff] %v273_v59  ;;  %v164_v61 = vadd.f32 %v163_v60, %v508_v40  ;;  %v276_v62 = vpop.f32.mrb[4].mxu1  ;;  %v165_v63 = vpop.f32.mrb[5].mxu0 }
  0xea   :  { %v277_v0 = vadd.f32 %v276_v62, %v510_v41  ;;  %v166_v1 = vadd.f32 %v165_v63, %v512_v42  ;;  %v278_v2 = vpop.f32.mrb[5].mxu1 }
  0xeb   :  { %319 = vst [vmem:[%s647_s3 + $0x40] sm:$0xff] %v164_v61  ;;  %v279_v3 = vadd.f32 %v278_v2, %v514_v43 }
  0xec   :  { %321 = vst [vmem:[%s647_s3 + $0x50] sm:$0xff] %v277_v0  ;;  %320 = vst [vmem:[%s647_s3 + $0x48] sm:$0xff] %v166_v1  ;;  %v169_v4 = vpop.f32.mrb[6].mxu0 }
  0xed   :  { %322 = vst [vmem:[%s647_s3 + $0x58] sm:$0xff] %v279_v3  ;;  %v170_v5 = vadd.f32 %v169_v4, %v508_v40  ;;  %v282_v6 = vpop.f32.mrb[6].mxu1  ;;  %v171_v7 = vpop.f32.mrb[7].mxu0 }
  0xee   :  { %v283_v8 = vadd.f32 %v282_v6, %v510_v41  ;;  %v172_v9 = vadd.f32 %v171_v7, %v512_v42  ;;  %v284_v10 = vpop.f32.mrb[7].mxu1 }
  0xef   :  { %323 = vst [vmem:[%s647_s3 + $0x60] sm:$0xff] %v170_v5  ;;  %v285_v11 = vadd.f32 %v284_v10, %v514_v43 }
  0xf0   :  { %325 = vst [vmem:[%s647_s3 + $0x70] sm:$0xff] %v283_v8  ;;  %324 = vst [vmem:[%s647_s3 + $0x68] sm:$0xff] %v172_v9  ;;  %v175_v12 = vpop.f32.mrb[8].mxu0 }
  0xf1   :  { %326 = vst [vmem:[%s647_s3 + $0x78] sm:$0xff] %v285_v11  ;;  %v176_v13 = vadd.f32 %v175_v12, %v508_v40  ;;  %v288_v14 = vpop.f32.mrb[8].mxu1  ;;  %v177_v15 = vpop.f32.mrb[9].mxu0 }
  0xf2   :  { %v289_v16 = vadd.f32 %v288_v14, %v510_v41  ;;  %v178_v17 = vadd.f32 %v177_v15, %v512_v42  ;;  %v290_v18 = vpop.f32.mrb[9].mxu1 }
  0xf3   :  { %327 = vst [vmem:[%s647_s3 + $0x80] sm:$0xff] %v176_v13  ;;  %v291_v19 = vadd.f32 %v290_v18, %v514_v43 }
  0xf4   :  { %329 = vst [vmem:[%s647_s3 + $0x90] sm:$0xff] %v289_v16  ;;  %328 = vst [vmem:[%s647_s3 + $0x88] sm:$0xff] %v178_v17  ;;  %v181_v20 = vpop.f32.mrb[10].mxu0 }
  0xf5   :  { %330 = vst [vmem:[%s647_s3 + $0x98] sm:$0xff] %v291_v19  ;;  %v182_v21 = vadd.f32 %v181_v20, %v508_v40  ;;  %v294_v22 = vpop.f32.mrb[10].mxu1  ;;  %v183_v23 = vpop.f32.mrb[11].mxu0 }
  0xf6   :  { %v295_v24 = vadd.f32 %v294_v22, %v510_v41  ;;  %v184_v25 = vadd.f32 %v183_v23, %v512_v42  ;;  %v296_v26 = vpop.f32.mrb[11].mxu1 }
  0xf7   :  { %331 = vst [vmem:[%s647_s3 + $0xa0] sm:$0xff] %v182_v21  ;;  %v297_v27 = vadd.f32 %v296_v26, %v514_v43 }
  0xf8   :  { %333 = vst [vmem:[%s647_s3 + $0xb0] sm:$0xff] %v295_v24  ;;  %332 = vst [vmem:[%s647_s3 + $0xa8] sm:$0xff] %v184_v25  ;;  %v187_v28 = vpop.f32.mrb[12].mxu0 }
  0xf9   :  { %334 = vst [vmem:[%s647_s3 + $0xb8] sm:$0xff] %v297_v27  ;;  %v188_v29 = vadd.f32 %v187_v28, %v508_v40  ;;  %v300_v30 = vpop.f32.mrb[12].mxu1  ;;  %v189_v31 = vpop.f32.mrb[13].mxu0 }
  0xfa   :  { %v301_v32 = vadd.f32 %v300_v30, %v510_v41  ;;  %v190_v33 = vadd.f32 %v189_v31, %v512_v42  ;;  %v302_v34 = vpop.f32.mrb[13].mxu1 }
  0xfb   :  { %335 = vst [vmem:[%s647_s3 + $0xc0] sm:$0xff] %v188_v29  ;;  %v303_v35 = vadd.f32 %v302_v34, %v514_v43 }
  0xfc   :  { %337 = vst [vmem:[%s647_s3 + $0xd0] sm:$0xff] %v301_v32  ;;  %336 = vst [vmem:[%s647_s3 + $0xc8] sm:$0xff] %v190_v33  ;;  %v193_v36 = vpop.f32.mrb[14].mxu0 }
  0xfd   :  { %338 = vst [vmem:[%s647_s3 + $0xd8] sm:$0xff] %v303_v35  ;;  %v194_v37 = vadd.f32 %v193_v36, %v508_v40  ;;  %v306_v38 = vpop.f32.mrb[14].mxu1  ;;  %v195_v39 = vpop.f32.mrb[15].mxu0 }
  0xfe   :  { %v307_v44 = vadd.f32 %v306_v38, %v510_v41  ;;  %v196_v45 = vadd.f32 %v195_v39, %v512_v42  ;;  %v308_v46 = vpop.f32.mrb[15].mxu1 }
  0xff   :  { %339 = vst [vmem:[%s647_s3 + $0xe0] sm:$0xff] %v194_v37  ;;  %v309_v47 = vadd.f32 %v308_v46, %v514_v43 }
 0x100   :  { %341 = vst [vmem:[%s647_s3 + $0xf0] sm:$0xff] %v307_v44  ;;  %340 = vst [vmem:[%s647_s3 + $0xe8] sm:$0xff] %v196_v45 }
 0x101   :  { %342 = vst [vmem:[%s647_s3 + $0xf8] sm:$0xff] %v309_v47 }

// kernel: word_completion_forward.4
= control target key start
LH: loop header
LB: loop body
LE: loop exit
PB: predicated region body
PF: predicated region fallthrough
CT: control target
= control target key end

     0   :  { %v2690_v3 = vmov 0.0   ;;  %s3702_s1 = inlined_call_operand.vmem [shape: f32[128,512], index: 1, kind: input, shape index: {}]   ;;  %s3703_s0 = inlined_call_operand.vmem [shape: f32[8,8,512], index: 0, kind: input, shape index: {}]   ;;  %s3704_s2 = inlined_call_operand.vmem [shape: f32[8,8,128], index: 2, kind: output, shape index: {0}]   ;;  %s3705_s4 = inlined_call_operand.vmem [shape: f32[8,128], index: 4, kind: output, shape index: {2}]   ;;  %s3706_s3 = inlined_call_operand.vmem [shape: f32[8,128], index: 3, kind: output, shape index: {1}]  }
   0x1   :  { %v22_v0 = vld [vmem:[%s3702_s1 + $0x8] sm:$0xff]  ;;  %v21_v2 = vld [vmem:[%s3702_s1] sm:$0xff]  ;;  %149 = vmatprep.mubr.f32.mxu0 %v2690_v3  ;;  %220 = vmatprep.mubr.f32.mxu1 %v2690_v3  ;;  %v24_v19 = vld [vmem:[%s3702_s1 + $0x18] sm:$0xff] }
   0x2   :  { %v26_v1 = vld [vmem:[%s3702_s1 + $0x28] sm:$0xff]  ;;  %v25_v5 = vld [vmem:[%s3702_s1 + $0x20] sm:$0xff]  ;;  %v28_v20 = vld [vmem:[%s3702_s1 + $0x38] sm:$0xff] }
   0x3   :  { %v2727_v4 = vpack.c.bf16 %v26_v1, %v22_v0  ;;  %v30_v6 = vld [vmem:[%s3702_s1 + $0x48] sm:$0xff]  ;;  %v2738_v8 = vpack.c.bf16 %v25_v5, %v21_v2  ;;  %v29_v10 = vld [vmem:[%s3702_s1 + $0x40] sm:$0xff]  ;;  %v2779_v22 = vpack.c.bf16 %v28_v20, %v24_v19  ;;  %v23_v23 = vld [vmem:[%s3702_s1 + $0x10] sm:$0xff] }
   0x4   :  { %v34_v7 = vld [vmem:[%s3702_s1 + $0x68] sm:$0xff]  ;;  %v33_v11 = vld [vmem:[%s3702_s1 + $0x60] sm:$0xff]  ;;  %v27_v24 = vld [vmem:[%s3702_s1 + $0x30] sm:$0xff] }
   0x5   :  { %v2740_v9 = vpack.c.bf16 %v34_v7, %v30_v6  ;;  %v38_v12 = vld [vmem:[%s3702_s1 + $0x88] sm:$0xff]  ;;  %2050 = vmatprep.subr.bf16.mxu0 %v2727_v4  ;;  %v2756_v14 = vpack.c.bf16 %v33_v11, %v29_v10  ;;  %v37_v15 = vld [vmem:[%s3702_s1 + $0x80] sm:$0xff]  ;;  %v2787_v25 = vpack.c.bf16 %v27_v24, %v23_v23  ;;  %2082 = vmatprep.subr.bf16.mxu1 %v2779_v22  ;;  %v32_v27 = vld [vmem:[%s3702_s1 + $0x58] sm:$0xff] }
   0x6   :  { %v42_v13 = vld [vmem:[%s3702_s1 + $0xa8] sm:$0xff]  ;;  %2052 = vmatpush1.bf16.msra.mxu0 %v2738_v8  ;;  %v41_v16 = vld [vmem:[%s3702_s1 + $0xa0] sm:$0xff]  ;;  %v36_v28 = vld [vmem:[%s3702_s1 + $0x78] sm:$0xff] }
   0x7   :  { %2054 = vmatprep.subr.bf16.mxu0 %v2740_v9  ;;  %v2765_v17 = vpack.c.bf16 %v42_v13, %v38_v12  ;;  %v46_v18 = vld [vmem:[%s3702_s1 + $0xc8] sm:$0xff]  ;;  %v2790_v26 = vpack.c.bf16 %v41_v16, %v37_v15  ;;  %v31_v29 = vld [vmem:[%s3702_s1 + $0x50] sm:$0xff]  ;;  %v45_v31 = vld [vmem:[%s3702_s1 + $0xc0] sm:$0xff]  ;;  %2084 = vmatpush1.bf16.msra.mxu1 %v2787_v25  ;;  %v2812_v33 = vpack.c.bf16 %v36_v28, %v32_v27 }
   0x8   :  { %v50_v21 = vld [vmem:[%s3702_s1 + $0xe8] sm:$0xff]  ;;  %v49_v32 = vld [vmem:[%s3702_s1 + $0xe0] sm:$0xff]  ;;  %v35_v34 = vld [vmem:[%s3702_s1 + $0x70] sm:$0xff] }
   0x9   :  { %v2803_v30 = vpack.c.bf16 %v50_v21, %v46_v18  ;;  %v54_v35 = vld [vmem:[%s3702_s1 + $0x108] sm:$0xff]  ;;  %v2823_v37 = vpack.c.bf16 %v35_v34, %v31_v29  ;;  %v40_v38 = vld [vmem:[%s3702_s1 + $0x98] sm:$0xff]  ;;  %2086 = vmatprep.subr.bf16.mxu1 %v2812_v33  ;;  %v39_v40 = vld [vmem:[%s3702_s1 + $0x90] sm:$0xff]  ;;  %v2839_v42 = vpack.c.bf16 %v49_v32, %v45_v31 }
   0xa   :  { %2056 = vmatpush1.bf16.msra.mxu0 %v2756_v14  ;;  %v58_v36 = vld [vmem:[%s3702_s1 + $0x128] sm:$0xff]  ;;  %v44_v39 = vld [vmem:[%s3702_s1 + $0xb8] sm:$0xff]  ;;  %v43_v41 = vld [vmem:[%s3702_s1 + $0xb0] sm:$0xff] }
   0xb   :  { %2058 = vmatprep.subr.bf16.mxu0 %v2765_v17  ;;  %v53_v43 = vld [vmem:[%s3702_s1 + $0x100] sm:$0xff]  ;;  %v2847_v45 = vpack.c.bf16 %v44_v39, %v40_v38  ;;  %v2850_v46 = vpack.c.bf16 %v58_v36, %v54_v35  ;;  %2088 = vmatpush1.bf16.msra.mxu1 %v2823_v37  ;;  %v62_v47 = vld [vmem:[%s3702_s1 + $0x148] sm:$0xff]  ;;  %v2856_v48 = vpack.c.bf16 %v43_v41, %v39_v40  ;;  %v48_v49 = vld [vmem:[%s3702_s1 + $0xd8] sm:$0xff] }
   0xc   :  { %v57_v44 = vld [vmem:[%s3702_s1 + $0x120] sm:$0xff]  ;;  %v52_v50 = vld [vmem:[%s3702_s1 + $0xf8] sm:$0xff]  ;;  %v66_v51 = vld [vmem:[%s3702_s1 + $0x168] sm:$0xff] }
   0xd   :  { %2090 = vmatprep.subr.bf16.mxu1 %v2847_v45  ;;  %v2868_v52 = vpack.c.bf16 %v52_v50, %v48_v49  ;;  %v47_v53 = vld [vmem:[%s3702_s1 + $0xd0] sm:$0xff]  ;;  %v2877_v55 = vpack.c.bf16 %v57_v44, %v53_v43  ;;  %v56_v56 = vld [vmem:[%s3702_s1 + $0x118] sm:$0xff]  ;;  %v2886_v58 = vpack.c.bf16 %v66_v51, %v62_v47  ;;  %v61_v59 = vld [vmem:[%s3702_s1 + $0x140] sm:$0xff] }
   0xe   :  { %2060 = vmatpush1.bf16.msra.mxu0 %v2790_v26  ;;  %v51_v54 = vld [vmem:[%s3702_s1 + $0xf0] sm:$0xff]  ;;  %v60_v57 = vld [vmem:[%s3702_s1 + $0x138] sm:$0xff]  ;;  %v65_v60 = vld [vmem:[%s3702_s1 + $0x160] sm:$0xff] }
   0xf   :  { %2062 = vmatprep.subr.bf16.mxu0 %v2803_v30  ;;  %2092 = vmatpush1.bf16.msra.mxu1 %v2856_v48  ;;  %v70_v61 = vld [vmem:[%s3702_s1 + $0x188] sm:$0xff]  ;;  %v2898_v62 = vpack.c.bf16 %v51_v54, %v47_v53  ;;  %v2904_v0 = vpack.c.bf16 %v60_v57, %v56_v56  ;;  %v55_v1 = vld [vmem:[%s3702_s1 + $0x110] sm:$0xff]  ;;  %v64_v5 = vld [vmem:[%s3702_s1 + $0x158] sm:$0xff]  ;;  %v2919_v7 = vpack.c.bf16 %v65_v60, %v61_v59 }
  0x10   :  { %v74_v63 = vld [vmem:[%s3702_s1 + $0x1a8] sm:$0xff]  ;;  %2094 = vmatprep.subr.bf16.mxu1 %v2868_v52  ;;  %v59_v2 = vld [vmem:[%s3702_s1 + $0x130] sm:$0xff]  ;;  %v68_v6 = vld [vmem:[%s3702_s1 + $0x178] sm:$0xff] }
  0x11   :  { %v2922_v10 = vpack.c.bf16 %v74_v63, %v70_v61  ;;  %v69_v11 = vld [vmem:[%s3702_s1 + $0x180] sm:$0xff]  ;;  %v78_v13 = vld [vmem:[%s3702_s1 + $0x1c8] sm:$0xff]  ;;  %v2934_v15 = vpack.c.bf16 %v59_v2, %v55_v1  ;;  %v2940_v18 = vpack.c.bf16 %v68_v6, %v64_v5  ;;  %v63_v19 = vld [vmem:[%s3702_s1 + $0x150] sm:$0xff] }
  0x12   :  { %2064 = vmatpush1.bf16.msra.mxu0 %v2839_v42  ;;  %v73_v12 = vld [vmem:[%s3702_s1 + $0x1a0] sm:$0xff]  ;;  %v82_v16 = vld [vmem:[%s3702_s1 + $0x1e8] sm:$0xff]  ;;  %v67_v20 = vld [vmem:[%s3702_s1 + $0x170] sm:$0xff] }
  0x13   :  { %2066 = vmatprep.subr.bf16.mxu0 %v2850_v46  ;;  %2096 = vmatpush1.bf16.msra.mxu1 %v2898_v62  ;;  %v72_v21 = vld [vmem:[%s3702_s1 + $0x198] sm:$0xff]  ;;  %v2955_v24 = vpack.c.bf16 %v73_v12, %v69_v11  ;;  %v2958_v27 = vpack.c.bf16 %v82_v16, %v78_v13  ;;  %v77_v28 = vld [vmem:[%s3702_s1 + $0x1c0] sm:$0xff]  ;;  %v2967_v31 = vpack.c.bf16 %v67_v20, %v63_v19  ;;  %v71_v34 = vld [vmem:[%s3702_s1 + $0x190] sm:$0xff] }
  0x14   :  { %2098 = vmatprep.subr.bf16.mxu1 %v2904_v0  ;;  %v76_v23 = vld [vmem:[%s3702_s1 + $0x1b8] sm:$0xff]  ;;  %v81_v29 = vld [vmem:[%s3702_s1 + $0x1e0] sm:$0xff]  ;;  %v75_v35 = vld [vmem:[%s3702_s1 + $0x1b0] sm:$0xff] }
  0x15   :  { %v2970_v32 = vpack.c.bf16 %v76_v23, %v72_v21  ;;  %v80_v36 = vld [vmem:[%s3702_s1 + $0x1d8] sm:$0xff]  ;;  %v2985_v39 = vpack.c.bf16 %v81_v29, %v77_v28  ;;  %v2989_v40 = vpack.c.bf16 %v75_v35, %v71_v34  ;;  %v79_v43 = vld [vmem:[%s3702_s1 + $0x1d0] sm:$0xff]  ;;  %v17_v49 = vld [vmem:[%s3703_s0] sm:$0xff] }
  0x16   :  { %2068 = vmatpush1.bf16.msra.mxu0 %v2877_v55  ;;  %v84_v38 = vld [vmem:[%s3702_s1 + $0x1f8] sm:$0xff]  ;;  %v83_v44 = vld [vmem:[%s3702_s1 + $0x1f0] sm:$0xff]  ;;  %v18_v50 = vld [vmem:[%s3703_s0 + $0x8] sm:$0xff] }
  0x17   :  { %2070 = vmatprep.subr.bf16.mxu0 %v2886_v58  ;;  %2100 = vmatpush1.bf16.msra.mxu1 %v2934_v15  ;;  %v2992_v41 = vpack.c.bf16 %v84_v38, %v80_v36  ;;  %v3002_v47 = vpack.c.bf16 %v83_v44, %v79_v43  ;;  %v20_v60 = vld [vmem:[%s3703_s0 + $0x18] sm:$0xff]  ;;  %v19_v2 = vld [vmem:[%s3703_s0 + $0x10] sm:$0xff] }
  0x18   :  { %2102 = vmatprep.subr.bf16.mxu1 %v2940_v18  ;;  %v1995_v44 = vld [vmem:[%s3703_s0 + $0x30] sm:$0xff] }
  0x1a   :  { %2072 = vmatpush1.bf16.msra.mxu0 %v2919_v7 }
  0x1b   :  { %2074 = vmatprep.subr.bf16.mxu0 %v2922_v10  ;;  %2104 = vmatpush1.bf16.msra.mxu1 %v2967_v31 }
  0x1c   :  { %2106 = vmatprep.subr.bf16.mxu1 %v2970_v32 }
  0x1e   :  { %2076 = vmatpush1.bf16.msra.mxu0 %v2955_v24 }
  0x1f   :  { %2078 = vmatprep.subr.bf16.mxu0 %v2958_v27  ;;  %2108 = vmatpush1.bf16.msra.mxu1 %v2989_v40 }
  0x20   :  { %2110 = vmatprep.subr.bf16.mxu1 %v2992_v41 }
  0x22   :  { %2080 = vmatpush1.bf16.msra.mxu0 %v2985_v39 }
  0x23   :  { %2114 = vmatprep.subr.bf16.mxu0 %v2727_v4  ;;  %2112 = vmatpush1.bf16.msra.mxu1 %v3002_v47 }
  0x24   :  { %2146 = vmatprep.subr.bf16.mxu1 %v2779_v22 }
  0x25   :  { %150 = vmatmul.mubr.f32.vlgmr.msra.gmra.mrb[0].mxu0 %v2690_v3 }
  0x26   :  { %2116 = vmatpush1.bf16.msra.mxu0 %v2738_v8  ;;  %393 = vmatprep.mubr.f32.mxu0 %v2690_v3 }
  0x27   :  { %2118 = vmatprep.subr.bf16.mxu0 %v2740_v9  ;;  %221 = vmatmul.mubr.f32.vlgmr.msra.gmra.mrb[0].mxu1 %v2690_v3 }
  0x28   :  { %2148 = vmatpush1.bf16.msra.mxu1 %v2787_v25  ;;  %464 = vmatprep.mubr.f32.mxu1 %v2690_v3 }
  0x29   :  { %2150 = vmatprep.subr.bf16.mxu1 %v2812_v33 }
  0x2a   :  { %2120 = vmatpush1.bf16.msra.mxu0 %v2756_v14 }
  0x2b   :  { %2122 = vmatprep.subr.bf16.mxu0 %v2765_v17 }
  0x2c   :  { %2152 = vmatpush1.bf16.msra.mxu1 %v2823_v37 }
  0x2d   :  { %2154 = vmatprep.subr.bf16.mxu1 %v2847_v45 }
  0x2e   :  { %2124 = vmatpush1.bf16.msra.mxu0 %v2790_v26 }
  0x2f   :  { %2126 = vmatprep.subr.bf16.mxu0 %v2803_v30 }
  0x30   :  { %2156 = vmatpush1.bf16.msra.mxu1 %v2856_v48 }
  0x31   :  { %2158 = vmatprep.subr.bf16.mxu1 %v2868_v52 }
  0x32   :  { %2128 = vmatpush1.bf16.msra.mxu0 %v2839_v42 }
  0x33   :  { %2130 = vmatprep.subr.bf16.mxu0 %v2850_v46 }
  0x34   :  { %2160 = vmatpush1.bf16.msra.mxu1 %v2898_v62 }
  0x35   :  { %2162 = vmatprep.subr.bf16.mxu1 %v2904_v0 }
  0x36   :  { %2132 = vmatpush1.bf16.msra.mxu0 %v2877_v55 }
  0x37   :  { %2134 = vmatprep.subr.bf16.mxu0 %v2886_v58 }
  0x38   :  { %2164 = vmatpush1.bf16.msra.mxu1 %v2934_v15 }
  0x39   :  { %2166 = vmatprep.subr.bf16.mxu1 %v2940_v18 }
  0x3a   :  { %2136 = vmatpush1.bf16.msra.mxu0 %v2919_v7 }
  0x3b   :  { %2138 = vmatprep.subr.bf16.mxu0 %v2922_v10 }
  0x3c   :  { %2168 = vmatpush1.bf16.msra.mxu1 %v2967_v31 }
  0x3d   :  { %2170 = vmatprep.subr.bf16.mxu1 %v2970_v32 }
  0x3e   :  { %2140 = vmatpush1.bf16.msra.mxu0 %v2955_v24 }
  0x3f   :  { %2142 = vmatprep.subr.bf16.mxu0 %v2958_v27 }
  0x40   :  { %2172 = vmatpush1.bf16.msra.mxu1 %v2989_v40 }
  0x41   :  { %2174 = vmatprep.subr.bf16.mxu1 %v2992_v41 }
  0x42   :  { %2144 = vmatpush1.bf16.msra.mxu0 %v2985_v39 }
  0x43   :  { %2178 = vmatprep.subr.bf16.mxu0 %v2727_v4 }
  0x44   :  { %2176 = vmatpush1.bf16.msra.mxu1 %v3002_v47 }
  0x45   :  { %2210 = vmatprep.subr.bf16.mxu1 %v2779_v22 }
  0xf8   :  { %v151_v51 = vpop.f32.mrb[0].mxu0 }
  0xf9   :  { %v227_v53 = vadd.f32 %v151_v51, %v17_v49  ;;  %v153_v54 = vpop.f32.mrb[1].mxu0 }
  0xfa   :  { %v228_v56 = vadd.f32 %v153_v54, %v18_v50  ;;  %v222_v61 = vpop.f32.mrb[0].mxu1 }
  0xfb   :  { %v1990_v57 = vmul.f32 -1.442695, %v227_v53  ;;  %v224_v63 = vpop.f32.mrb[1].mxu1  ;;  %v229_v6 = vadd.f32 %v222_v61, %v19_v2 }
  0xfc   :  { %v1991_v59 = vmul.f32 -1.442695, %v228_v56  ;;  %v230_v1 = vadd.f32 %v224_v63, %v20_v60 }
  0xfd   :  { %2562 = vpow2.f32 %v1990_v57 }
  0xfe   :  { %2564 = vpow2.f32 %v1991_v59  ;;  %v1992_v5 = vmul.f32 -1.442695, %v230_v1 }
 0x100   :  { %2566 = vpow2.f32 %v1992_v5 }
 0x101   :  { %2568 = vtanh.f32 %v229_v6 }
 0x107   :  { %v2563_v11 = vpop.eup %2562 }
 0x108   :  { %v2565_v12 = vpop.eup %2564  ;;  %v234_v13 = vadd.f32 1.0, %v2563_v11 }
 0x109   :  { %v240_v16 = vadd.f32 1.0, %v2565_v12 }
 0x10a   :  { %2570 = vrcp.f32 %v234_v13  ;;  %v2567_v19 = vpop.eup %2566 }
 0x10b   :  { %2572 = vrcp.f32 %v240_v16  ;;  %v2569_v20 = vpop.eup %2568  ;;  %v247_v23 = vadd.f32 1.0, %v2567_v19  ;;  %v803_v16 = vld [vmem:[%s3702_s1 + $0x180] sm:$0xff] }
 0x10c   :  { %v807_v19 = vld [vmem:[%s3702_s1 + $0x1a0] sm:$0xff] }
 0x10d   :  { %2574 = vrcp.f32 %v247_v23  ;;  %v3211_v23 = vpack.c.bf16 %v807_v19, %v803_v16  ;;  %v1008_v16 = vld [vmem:[%s3702_s1 + $0x40] sm:$0xff] }
 0x10e   :  { %v1012_v19 = vld [vmem:[%s3702_s1 + $0x60] sm:$0xff] }
 0x114   :  { %v2571_v21 = vpop.eup %2570 }
 0x115   :  { %v2573_v28 = vpop.eup %2572  ;;  %v252_v29 = vmul.f32 %v2571_v21, %v2569_v20  ;;  %v812_v20 = vld [vmem:[%s3702_s1 + $0x1c8] sm:$0xff] }
 0x116   :  { %v251_v34 = vmul.f32 0.0, %v2573_v28  ;;  %v816_v21 = vld [vmem:[%s3702_s1 + $0x1e8] sm:$0xff] }
 0x117   :  { %v2575_v36 = vpop.eup %2574  ;;  %v3214_v28 = vpack.c.bf16 %v816_v21, %v812_v20  ;;  %v3306_v21 = vpack.c.bf16 %v1012_v19, %v1008_v16  ;;  %v1062_v16 = vld [vmem:[%s3702_s1 + $0x1f0] sm:$0xff] }
 0x118   :  { %v3056_v35 = vadd.f32 %v252_v29, %v251_v34  ;;  %v811_v29 = vld [vmem:[%s3702_s1 + $0x1c0] sm:$0xff] }
 0x119   :  { %v815_v34 = vld [vmem:[%s3702_s1 + $0x1e0] sm:$0xff] }
 0x11a   :  { %2576 = vtanh.f32 %v3056_v35 }
 0x124   :  { %v2577_v38 = vpop.eup %2576 }
 0x125   :  { %v255_v43 = vmul.f32 %v2577_v38, %v2575_v36  ;;  %v2001_v36 = vld [vmem:[%s3703_s0 + $0x40] sm:$0xff]  ;;  %v2002_v38 = vld [vmem:[%s3703_s0 + $0x48] sm:$0xff] }
 0x127   :  { %258 = vst [vmem:[%s3704_s2] sm:$0xff] %v255_v43  ;;  %394 = vmatmul.mubr.f32.vlgmr.msra.gmra.mrb[2].mxu0 %v255_v43  ;;  %465 = vmatmul.mubr.f32.vlgmr.msra.gmra.mrb[2].mxu1 %v255_v43 }
 0x128   :  { %2180 = vmatpush1.bf16.msra.mxu0 %v2738_v8  ;;  %2212 = vmatpush1.bf16.msra.mxu1 %v2787_v25 }
 0x129   :  { %2182 = vmatprep.subr.bf16.mxu0 %v2740_v9  ;;  %2214 = vmatprep.subr.bf16.mxu1 %v2812_v33 }
 0x12a   :  { %638 = vmatprep.mubr.f32.mxu0 %v2690_v3  ;;  %709 = vmatprep.mubr.f32.mxu1 %v2690_v3 }
 0x12c   :  { %2184 = vmatpush1.bf16.msra.mxu0 %v2756_v14  ;;  %2216 = vmatpush1.bf16.msra.mxu1 %v2823_v37 }
 0x12d   :  { %2186 = vmatprep.subr.bf16.mxu0 %v2765_v17  ;;  %2218 = vmatprep.subr.bf16.mxu1 %v2847_v45 }
 0x130   :  { %2188 = vmatpush1.bf16.msra.mxu0 %v2790_v26  ;;  %2220 = vmatpush1.bf16.msra.mxu1 %v2856_v48 }
 0x131   :  { %2190 = vmatprep.subr.bf16.mxu0 %v2803_v30  ;;  %2222 = vmatprep.subr.bf16.mxu1 %v2868_v52  ;;  %v1993_v30 = vld [vmem:[%s3703_s0 + $0x20] sm:$0xff] }
 0x134   :  { %2192 = vmatpush1.bf16.msra.mxu0 %v2839_v42  ;;  %2224 = vmatpush1.bf16.msra.mxu1 %v2898_v62  ;;  %v1994_v42 = vld [vmem:[%s3703_s0 + $0x28] sm:$0xff] }
 0x135   :  { %2194 = vmatprep.subr.bf16.mxu0 %v2850_v46  ;;  %2226 = vmatprep.subr.bf16.mxu1 %v2904_v0 }
 0x138   :  { %2196 = vmatpush1.bf16.msra.mxu0 %v2877_v55  ;;  %2228 = vmatpush1.bf16.msra.mxu1 %v2934_v15 }
 0x139   :  { %2198 = vmatprep.subr.bf16.mxu0 %v2886_v58  ;;  %2230 = vmatprep.subr.bf16.mxu1 %v2940_v18 }
 0x13c   :  { %2200 = vmatpush1.bf16.msra.mxu0 %v2919_v7  ;;  %2232 = vmatpush1.bf16.msra.mxu1 %v2967_v31 }
 0x13d   :  { %2202 = vmatprep.subr.bf16.mxu0 %v2922_v10  ;;  %2234 = vmatprep.subr.bf16.mxu1 %v2970_v32 }
 0x140   :  { %2204 = vmatpush1.bf16.msra.mxu0 %v2955_v24  ;;  %2236 = vmatpush1.bf16.msra.mxu1 %v2989_v40 }
 0x141   :  { %2206 = vmatprep.subr.bf16.mxu0 %v2958_v27  ;;  %2238 = vmatprep.subr.bf16.mxu1 %v2992_v41 }
 0x144   :  { %2208 = vmatpush1.bf16.msra.mxu0 %v2985_v39  ;;  %2240 = vmatpush1.bf16.msra.mxu1 %v3002_v47 }
 0x145   :  { %2242 = vmatprep.subr.bf16.mxu0 %v2727_v4  ;;  %2274 = vmatprep.subr.bf16.mxu1 %v2779_v22  ;;  %v1996_v4 = vld [vmem:[%s3703_s0 + $0x38] sm:$0xff] }
 0x1fa   :  { %v395_v46 = vpop.f32.mrb[2].mxu0  ;;  %v466_v55 = vpop.f32.mrb[2].mxu1 }
 0x1fb   :  { %v471_v58 = vadd.f32 %v1993_v30, %v395_v46  ;;  %v397_v7 = vpop.f32.mrb[3].mxu0  ;;  %v468_v10 = vpop.f32.mrb[3].mxu1  ;;  %v473_v50 = vadd.f32 %v1995_v44, %v466_v55 }
 0x1fc   :  { %v472_v24 = vadd.f32 %v1994_v42, %v397_v7  ;;  %v474_v22 = vadd.f32 %v1996_v4, %v468_v10 }
 0x1fd   :  { %v1997_v27 = vmul.f32 -1.442695, %v471_v58 }
 0x1fe   :  { %v1998_v39 = vmul.f32 -1.442695, %v472_v24  ;;  %v1999_v49 = vmul.f32 -1.442695, %v474_v22  ;;  %v2004_v24 = vld [vmem:[%s3703_s0 + $0x58] sm:$0xff] }
 0x1ff   :  { %2578 = vpow2.f32 %v1997_v27 }
 0x200   :  { %2580 = vpow2.f32 %v1998_v39  ;;  %v2003_v39 = vld [vmem:[%s3703_s0 + $0x50] sm:$0xff] }
 0x201   :  { %2582 = vpow2.f32 %v1999_v49 }
 0x202   :  { %2584 = vtanh.f32 %v473_v50 }
 0x209   :  { %v2579_v51 = vpop.eup %2578 }
 0x20a   :  { %v2581_v53 = vpop.eup %2580  ;;  %v478_v54 = vadd.f32 1.0, %v2579_v51 }
 0x20b   :  { %v484_v56 = vadd.f32 1.0, %v2581_v53  ;;  %v2583_v57 = vpop.eup %2582 }
 0x20c   :  { %2586 = vrcp.f32 %v478_v54  ;;  %v2585_v59 = vpop.eup %2584  ;;  %v491_v1 = vadd.f32 1.0, %v2583_v57 }
 0x20d   :  { %2588 = vrcp.f32 %v484_v56 }
 0x20e   :  { %2590 = vrcp.f32 %v491_v1 }
 0x216   :  { %v2587_v60 = vpop.eup %2586 }
 0x217   :  { %v2589_v61 = vpop.eup %2588  ;;  %v496_v63 = vmul.f32 %v2587_v60, %v2585_v59 }
 0x218   :  { %v495_v2 = vmul.f32 %v2589_v61, %v3056_v35  ;;  %v2591_v6 = vpop.eup %2590  ;;  %v3223_v35 = vpack.c.bf16 %v815_v34, %v811_v29  ;;  %v1010_v29 = vld [vmem:[%s3702_s1 + $0x50] sm:$0xff] }
 0x219   :  { %v1014_v34 = vld [vmem:[%s3702_s1 + $0x70] sm:$0xff] }
 0x21a   :  { %v3109_v5 = vadd.f32 %v496_v63, %v495_v2 }
 0x21c   :  { %2592 = vtanh.f32 %v3109_v5 }
 0x226   :  { %v2593_v11 = vpop.eup %2592 }
 0x227   :  { %v499_v12 = vmul.f32 %v2593_v11, %v2591_v6  ;;  %v1005_v11 = vld [vmem:[%s3702_s1 + $0x28] sm:$0xff] }
 0x229   :  { %2000 = vst [vmem:[%s3704_s2 + $0x8] sm:$0xff] %v499_v12  ;;  %639 = vmatmul.mubr.f32.vlgmr.msra.gmra.mrb[4].mxu0 %v499_v12  ;;  %710 = vmatmul.mubr.f32.vlgmr.msra.gmra.mrb[4].mxu1 %v499_v12  ;;  %v1003_v12 = vld [vmem:[%s3702_s1 + $0x18] sm:$0xff] }
 0x22a   :  { %2244 = vmatpush1.bf16.msra.mxu0 %v2738_v8  ;;  %2276 = vmatpush1.bf16.msra.mxu1 %v2787_v25  ;;  %v780_v8 = vld [vmem:[%s3702_s1 + $0xc8] sm:$0xff]  ;;  %v783_v25 = vld [vmem:[%s3702_s1 + $0xe0] sm:$0xff] }
 0x22b   :  { %2246 = vmatprep.subr.bf16.mxu0 %v2740_v9  ;;  %2278 = vmatprep.subr.bf16.mxu1 %v2812_v33  ;;  %v784_v9 = vld [vmem:[%s3702_s1 + $0xe8] sm:$0xff] }
 0x22c   :  { %883 = vmatprep.mubr.f32.mxu0 %v2690_v3  ;;  %954 = vmatprep.mubr.f32.mxu1 %v2690_v3  ;;  %v788_v33 = vld [vmem:[%s3702_s1 + $0x108] sm:$0xff] }
 0x22e   :  { %2248 = vmatpush1.bf16.msra.mxu0 %v2756_v14  ;;  %2280 = vmatpush1.bf16.msra.mxu1 %v2823_v37  ;;  %v3143_v14 = vpack.c.bf16 %v784_v9, %v780_v8  ;;  %v792_v37 = vld [vmem:[%s3702_s1 + $0x128] sm:$0xff]  ;;  %v1007_v9 = vld [vmem:[%s3702_s1 + $0x38] sm:$0xff] }
 0x22f   :  { %2250 = vmatprep.subr.bf16.mxu0 %v2765_v17  ;;  %2282 = vmatprep.subr.bf16.mxu1 %v2847_v45  ;;  %v779_v17 = vld [vmem:[%s3702_s1 + $0xc0] sm:$0xff]  ;;  %v3161_v45 = vpack.c.bf16 %v792_v37, %v788_v33  ;;  %v3268_v33 = vpack.c.bf16 %v1007_v9, %v1003_v12  ;;  %v1055_v12 = vld [vmem:[%s3702_s1 + $0x1b8] sm:$0xff] }
 0x232   :  { %2252 = vmatpush1.bf16.msra.mxu0 %v2790_v26  ;;  %2284 = vmatpush1.bf16.msra.mxu1 %v2856_v48  ;;  %v3151_v26 = vpack.c.bf16 %v783_v25, %v779_v17  ;;  %v787_v48 = vld [vmem:[%s3702_s1 + $0x100] sm:$0xff] }
 0x233   :  { %2286 = vmatprep.subr.bf16.mxu1 %v2868_v52  ;;  %2254 = vmatprep.subr.bf16.mxu0 %v3143_v14  ;;  %v791_v52 = vld [vmem:[%s3702_s1 + $0x120] sm:$0xff] }
 0x234   :  { %v1000_v17 = vld [vmem:[%s3702_s1] sm:$0xff] }
 0x235   :  { %v1004_v25 = vld [vmem:[%s3702_s1 + $0x20] sm:$0xff] }
 0x236   :  { %2288 = vmatpush1.bf16.msra.mxu1 %v2898_v62  ;;  %2256 = vmatpush1.bf16.msra.mxu0 %v3151_v26  ;;  %v3169_v62 = vpack.c.bf16 %v791_v52, %v787_v48  ;;  %v3270_v37 = vpack.c.bf16 %v1004_v25, %v1000_v17  ;;  %v1002_v48 = vld [vmem:[%s3702_s1 + $0x10] sm:$0xff] }
 0x237   :  { %2290 = vmatprep.subr.bf16.mxu1 %v2904_v0  ;;  %2258 = vmatprep.subr.bf16.mxu0 %v3161_v45  ;;  %v796_v0 = vld [vmem:[%s3702_s1 + $0x148] sm:$0xff]  ;;  %v1006_v52 = vld [vmem:[%s3702_s1 + $0x30] sm:$0xff] }
 0x238   :  { %v1050_v25 = vld [vmem:[%s3702_s1 + $0x190] sm:$0xff] }
 0x23a   :  { %2292 = vmatpush1.bf16.msra.mxu1 %v2934_v15  ;;  %v800_v15 = vld [vmem:[%s3702_s1 + $0x168] sm:$0xff]  ;;  %2260 = vmatpush1.bf16.msra.mxu0 %v3169_v62 }
 0x23b   :  { %2294 = vmatprep.subr.bf16.mxu1 %v2940_v18  ;;  %v795_v18 = vld [vmem:[%s3702_s1 + $0x140] sm:$0xff] }
 0x23e   :  { %2296 = vmatpush1.bf16.msra.mxu1 %v2967_v31  ;;  %v3182_v31 = vpack.c.bf16 %v800_v15, %v796_v0  ;;  %v3279_v0 = vpack.c.bf16 %v1006_v52, %v1002_v48  ;;  %v1009_v15 = vld [vmem:[%s3702_s1 + $0x48] sm:$0xff]  ;;  %v1054_v48 = vld [vmem:[%s3702_s1 + $0x1b0] sm:$0xff]  ;;  %v1059_v52 = vld [vmem:[%s3702_s1 + $0x1d8] sm:$0xff] }
 0x23f   :  { %2298 = vmatprep.subr.bf16.mxu1 %v2970_v32  ;;  %v799_v32 = vld [vmem:[%s3702_s1 + $0x160] sm:$0xff] }
 0x240   :  { %2262 = vmatprep.subr.bf16.mxu0 %v3182_v31 }
 0x242   :  { %2300 = vmatpush1.bf16.msra.mxu1 %v2989_v40  ;;  %v804_v40 = vld [vmem:[%s3702_s1 + $0x188] sm:$0xff] }
 0x243   :  { %2302 = vmatprep.subr.bf16.mxu1 %v2992_v41  ;;  %v808_v41 = vld [vmem:[%s3702_s1 + $0x1a8] sm:$0xff] }
 0x244   :  { %v3195_v13 = vpack.c.bf16 %v808_v41, %v804_v40  ;;  %v1015_v41 = vld [vmem:[%s3702_s1 + $0x78] sm:$0xff] }
 0x246   :  { %2304 = vmatpush1.bf16.msra.mxu1 %v3002_v47  ;;  %v3193_v47 = vpack.c.bf16 %v799_v32, %v795_v18  ;;  %v1013_v18 = vld [vmem:[%s3702_s1 + $0x68] sm:$0xff]  ;;  %v1011_v32 = vld [vmem:[%s3702_s1 + $0x58] sm:$0xff] }
 0x247   :  { %2338 = vmatprep.subr.bf16.mxu1 %v3268_v33  ;;  %v3293_v40 = vpack.c.bf16 %v1013_v18, %v1009_v15  ;;  %v3304_v20 = vpack.c.bf16 %v1015_v41, %v1011_v32  ;;  %v1063_v15 = vld [vmem:[%s3702_s1 + $0x1f8] sm:$0xff]  ;;  %v3437_v18 = vpack.c.bf16 %v1054_v48, %v1050_v25  ;;  %v1058_v41 = vld [vmem:[%s3702_s1 + $0x1d0] sm:$0xff] }
 0x248   :  { %2264 = vmatpush1.bf16.msra.mxu0 %v3193_v47  ;;  %v3440_v32 = vpack.c.bf16 %v1063_v15, %v1059_v52  ;;  %v3451_v19 = vpack.c.bf16 %v1062_v16, %v1058_v41 }
 0x249   :  { %2266 = vmatprep.subr.bf16.mxu0 %v3195_v13 }
 0x24c   :  { %2268 = vmatpush1.bf16.msra.mxu0 %v3211_v23 }
 0x24d   :  { %2270 = vmatprep.subr.bf16.mxu0 %v3214_v28 }
 0x250   :  { %2272 = vmatpush1.bf16.msra.mxu0 %v3223_v35 }
 0x2fc   :  { %v640_v43 = vpop.f32.mrb[4].mxu0  ;;  %v711_v30 = vpop.f32.mrb[4].mxu1 }
 0x2fd   :  { %v716_v42 = vadd.f32 %v2001_v36, %v640_v43  ;;  %v642_v46 = vpop.f32.mrb[5].mxu0  ;;  %v713_v55 = vpop.f32.mrb[5].mxu1  ;;  %v718_v22 = vadd.f32 %v2003_v39, %v711_v30  ;;  %v3315_v36 = vpack.c.bf16 %v1014_v34, %v1010_v29  ;;  %v1021_v43 = vld [vmem:[%s3702_s1 + $0xa8] sm:$0xff]  ;;  %v1019_v30 = vld [vmem:[%s3702_s1 + $0x98] sm:$0xff]  ;;  %v2009_v29 = vld [vmem:[%s3703_s0 + $0x60] sm:$0xff] }
 0x2fe   :  { %v717_v58 = vadd.f32 %v2002_v38, %v642_v46  ;;  %v719_v27 = vadd.f32 %v2004_v24, %v713_v55  ;;  %v1017_v38 = vld [vmem:[%s3702_s1 + $0x88] sm:$0xff]  ;;  %v1023_v46 = vld [vmem:[%s3702_s1 + $0xb8] sm:$0xff]  ;;  %v1016_v55 = vld [vmem:[%s3702_s1 + $0x80] sm:$0xff] }
 0x2ff   :  { %v2005_v7 = vmul.f32 -1.442695, %v716_v42  ;;  %v3329_v42 = vpack.c.bf16 %v1021_v43, %v1017_v38  ;;  %v1018_v24 = vld [vmem:[%s3702_s1 + $0x90] sm:$0xff]  ;;  %v2010_v34 = vld [vmem:[%s3703_s0 + $0x68] sm:$0xff] }
 0x300   :  { %v2006_v10 = vmul.f32 -1.442695, %v717_v58  ;;  %v2007_v4 = vmul.f32 -1.442695, %v719_v27  ;;  %v1020_v58 = vld [vmem:[%s3702_s1 + $0xa0] sm:$0xff]  ;;  %v1022_v27 = vld [vmem:[%s3702_s1 + $0xb0] sm:$0xff] }
 0x301   :  { %2594 = vpow2.f32 %v2005_v7  ;;  %v3340_v7 = vpack.c.bf16 %v1023_v46, %v1019_v30  ;;  %v3351_v39 = vpack.c.bf16 %v1022_v27, %v1018_v24 }
 0x302   :  { %2596 = vpow2.f32 %v2006_v10  ;;  %v3342_v10 = vpack.c.bf16 %v1020_v58, %v1016_v55 }
 0x303   :  { %2598 = vpow2.f32 %v2007_v4  ;;  %v1027_v4 = vld [vmem:[%s3702_s1 + $0xd8] sm:$0xff] }
 0x304   :  { %2600 = vtanh.f32 %v718_v22  ;;  %v1031_v22 = vld [vmem:[%s3702_s1 + $0xf8] sm:$0xff] }
 0x30b   :  { %v2595_v44 = vpop.eup %2594 }
 0x30c   :  { %v2597_v49 = vpop.eup %2596  ;;  %v723_v50 = vadd.f32 1.0, %v2595_v44  ;;  %v3363_v44 = vpack.c.bf16 %v1031_v22, %v1027_v4  ;;  %v2012_v4 = vld [vmem:[%s3703_s0 + $0x78] sm:$0xff] }
 0x30d   :  { %v729_v51 = vadd.f32 1.0, %v2597_v49  ;;  %v2599_v53 = vpop.eup %2598  ;;  %v1026_v49 = vld [vmem:[%s3702_s1 + $0xd0] sm:$0xff] }
 0x30e   :  { %2602 = vrcp.f32 %v723_v50  ;;  %v2601_v54 = vpop.eup %2600  ;;  %v736_v60 = vadd.f32 1.0, %v2599_v53  ;;  %v1030_v50 = vld [vmem:[%s3702_s1 + $0xf0] sm:$0xff]  ;;  %v1035_v53 = vld [vmem:[%s3702_s1 + $0x118] sm:$0xff] }
 0x30f   :  { %2604 = vrcp.f32 %v729_v51  ;;  %v3371_v51 = vpack.c.bf16 %v1030_v50, %v1026_v49  ;;  %v2011_v49 = vld [vmem:[%s3703_s0 + $0x70] sm:$0xff] }
 0x310   :  { %2606 = vrcp.f32 %v736_v60 }
 0x318   :  { %v2603_v56 = vpop.eup %2602 }
 0x319   :  { %v2605_v57 = vpop.eup %2604  ;;  %v741_v59 = vmul.f32 %v2603_v56, %v2601_v54  ;;  %v1039_v54 = vld [vmem:[%s3702_s1 + $0x138] sm:$0xff] }
 0x31a   :  { %v740_v61 = vmul.f32 %v2605_v57, %v3109_v5  ;;  %v2607_v1 = vpop.eup %2606  ;;  %v1001_v5 = vld [vmem:[%s3702_s1 + $0x8] sm:$0xff]  ;;  %v3383_v56 = vpack.c.bf16 %v1039_v54, %v1035_v53  ;;  %v1034_v57 = vld [vmem:[%s3702_s1 + $0x110] sm:$0xff] }
 0x31b   :  { %v3257_v8 = vpack.c.bf16 %v1005_v11, %v1001_v5  ;;  %v1046_v5 = vld [vmem:[%s3702_s1 + $0x170] sm:$0xff]  ;;  %v1051_v11 = vld [vmem:[%s3702_s1 + $0x198] sm:$0xff] }
 0x31c   :  { %v3240_v63 = vadd.f32 %v741_v59, %v740_v61  ;;  %v1038_v59 = vld [vmem:[%s3702_s1 + $0x130] sm:$0xff]  ;;  %v1043_v61 = vld [vmem:[%s3702_s1 + $0x158] sm:$0xff]  ;;  %v3420_v17 = vpack.c.bf16 %v1055_v12, %v1051_v11 }
 0x31d   :  { %2306 = vmatprep.subr.bf16.mxu0 %v3257_v8  ;;  %v3391_v60 = vpack.c.bf16 %v1038_v59, %v1034_v57 }
 0x31e   :  { %2608 = vtanh.f32 %v3240_v63 }
 0x328   :  { %v2609_v2 = vpop.eup %2608 }
 0x329   :  { %v744_v6 = vmul.f32 %v2609_v2, %v2607_v1  ;;  %v1047_v1 = vld [vmem:[%s3702_s1 + $0x178] sm:$0xff]  ;;  %v1042_v2 = vld [vmem:[%s3702_s1 + $0x150] sm:$0xff] }
 0x32a   :  { %v3417_v9 = vpack.c.bf16 %v1046_v5, %v1042_v2 }
 0x32b   :  { %2008 = vst [vmem:[%s3704_s2 + $0x10] sm:$0xff] %v744_v6  ;;  %884 = vmatmul.mubr.f32.vlgmr.msra.gmra.mrb[6].mxu0 %v744_v6  ;;  %955 = vmatmul.mubr.f32.vlgmr.msra.gmra.mrb[6].mxu1 %v744_v6  ;;  %v3404_v6 = vpack.c.bf16 %v1047_v1, %v1043_v61 }
 0x32c   :  { %1128 = vmatprep.mubr.f32.mxu0 %v2690_v3  ;;  %1199 = vmatprep.mubr.f32.mxu1 %v2690_v3 }
 0x32d   :  { %2308 = vmatpush1.bf16.msra.mxu0 %v3270_v37  ;;  %2340 = vmatpush1.bf16.msra.mxu1 %v3279_v0 }
 0x32e   :  { %2310 = vmatprep.subr.bf16.mxu0 %v3293_v40  ;;  %2342 = vmatprep.subr.bf16.mxu1 %v3304_v20 }
 0x331   :  { %2312 = vmatpush1.bf16.msra.mxu0 %v3306_v21  ;;  %2344 = vmatpush1.bf16.msra.mxu1 %v3315_v36 }
 0x332   :  { %2314 = vmatprep.subr.bf16.mxu0 %v3329_v42  ;;  %2346 = vmatprep.subr.bf16.mxu1 %v3340_v7 }
 0x335   :  { %2316 = vmatpush1.bf16.msra.mxu0 %v3342_v10  ;;  %2348 = vmatpush1.bf16.msra.mxu1 %v3351_v39 }
 0x336   :  { %2318 = vmatprep.subr.bf16.mxu0 %v3143_v14  ;;  %2350 = vmatprep.subr.bf16.mxu1 %v3363_v44 }
 0x339   :  { %2320 = vmatpush1.bf16.msra.mxu0 %v3151_v26  ;;  %2352 = vmatpush1.bf16.msra.mxu1 %v3371_v51 }
 0x33a   :  { %2322 = vmatprep.subr.bf16.mxu0 %v3161_v45  ;;  %2354 = vmatprep.subr.bf16.mxu1 %v3383_v56 }
 0x33d   :  { %2324 = vmatpush1.bf16.msra.mxu0 %v3169_v62  ;;  %2356 = vmatpush1.bf16.msra.mxu1 %v3391_v60 }
 0x33e   :  { %2326 = vmatprep.subr.bf16.mxu0 %v3182_v31  ;;  %2358 = vmatprep.subr.bf16.mxu1 %v3404_v6 }
 0x341   :  { %2328 = vmatpush1.bf16.msra.mxu0 %v3193_v47  ;;  %2360 = vmatpush1.bf16.msra.mxu1 %v3417_v9 }
 0x342   :  { %2330 = vmatprep.subr.bf16.mxu0 %v3195_v13  ;;  %2362 = vmatprep.subr.bf16.mxu1 %v3420_v17 }
 0x345   :  { %2332 = vmatpush1.bf16.msra.mxu0 %v3211_v23  ;;  %2364 = vmatpush1.bf16.msra.mxu1 %v3437_v18 }
 0x346   :  { %2334 = vmatprep.subr.bf16.mxu0 %v3214_v28  ;;  %2366 = vmatprep.subr.bf16.mxu1 %v3440_v32 }
 0x349   :  { %2336 = vmatpush1.bf16.msra.mxu0 %v3223_v35  ;;  %2368 = vmatpush1.bf16.msra.mxu1 %v3451_v19 }
 0x34a   :  { %2370 = vmatprep.subr.bf16.mxu0 %v3257_v8  ;;  %2402 = vmatprep.subr.bf16.mxu1 %v3268_v33 }
 0x3fe   :  { %v885_v38 = vpop.f32.mrb[6].mxu0  ;;  %v956_v43 = vpop.f32.mrb[6].mxu1 }
 0x3ff   :  { %v961_v30 = vadd.f32 %v2009_v29, %v885_v38  ;;  %v887_v46 = vpop.f32.mrb[7].mxu0  ;;  %v958_v55 = vpop.f32.mrb[7].mxu1  ;;  %v963_v53 = vadd.f32 %v2011_v49, %v956_v43  ;;  %v2018_v29 = vld [vmem:[%s3703_s0 + $0x88] sm:$0xff] }
 0x400   :  { %v962_v58 = vadd.f32 %v2010_v34, %v887_v46  ;;  %v964_v22 = vadd.f32 %v2012_v4, %v958_v55 }
 0x401   :  { %v2013_v24 = vmul.f32 -1.442695, %v961_v30 }
 0x402   :  { %v2014_v27 = vmul.f32 -1.442695, %v962_v58  ;;  %v2015_v50 = vmul.f32 -1.442695, %v964_v22  ;;  %v2019_v22 = vld [vmem:[%s3703_s0 + $0x90] sm:$0xff] }
 0x403   :  { %2610 = vpow2.f32 %v2013_v24 }
 0x404   :  { %2612 = vpow2.f32 %v2014_v27  ;;  %v2020_v27 = vld [vmem:[%s3703_s0 + $0x98] sm:$0xff] }
 0x405   :  { %2614 = vpow2.f32 %v2015_v50 }
 0x406   :  { %2616 = vtanh.f32 %v963_v53 }
 0x40d   :  { %v2611_v54 = vpop.eup %2610 }
 0x40e   :  { %v2613_v57 = vpop.eup %2612  ;;  %v968_v59 = vadd.f32 1.0, %v2611_v54 }
 0x40f   :  { %v974_v61 = vadd.f32 1.0, %v2613_v57  ;;  %v2615_v1 = vpop.eup %2614 }
 0x410   :  { %2618 = vrcp.f32 %v968_v59  ;;  %v2617_v2 = vpop.eup %2616  ;;  %v981_v25 = vadd.f32 1.0, %v2615_v1 }
 0x411   :  { %2620 = vrcp.f32 %v974_v61 }
 0x412   :  { %2622 = vrcp.f32 %v981_v25 }
 0x41a   :  { %v2619_v5 = vpop.eup %2618 }
 0x41b   :  { %v2621_v11 = vpop.eup %2620  ;;  %v986_v12 = vmul.f32 %v2619_v5, %v2617_v2 }
 0x41c   :  { %v985_v48 = vmul.f32 %v2621_v11, %v3240_v63  ;;  %v2623_v15 = vpop.eup %2622  ;;  %v2017_v63 = vld [vmem:[%s3703_s0 + $0x80] sm:$0xff] }
 0x41e   :  { %v3471_v52 = vadd.f32 %v986_v12, %v985_v48 }
 0x420   :  { %2624 = vtanh.f32 %v3471_v52 }
 0x42a   :  { %v2625_v41 = vpop.eup %2624 }
 0x42b   :  { %v989_v16 = vmul.f32 %v2625_v41, %v2623_v15 }
 0x42d   :  { %2016 = vst [vmem:[%s3704_s2 + $0x18] sm:$0xff] %v989_v16  ;;  %1129 = vmatmul.mubr.f32.vlgmr.msra.gmra.mrb[8].mxu0 %v989_v16  ;;  %1200 = vmatmul.mubr.f32.vlgmr.msra.gmra.mrb[8].mxu1 %v989_v16 }
 0x42e   :  { %2372 = vmatpush1.bf16.msra.mxu0 %v3270_v37  ;;  %2404 = vmatpush1.bf16.msra.mxu1 %v3279_v0 }
 0x42f   :  { %2374 = vmatprep.subr.bf16.mxu0 %v3293_v40  ;;  %2406 = vmatprep.subr.bf16.mxu1 %v3304_v20 }
 0x430   :  { %1373 = vmatprep.mubr.f32.mxu0 %v2690_v3  ;;  %1444 = vmatprep.mubr.f32.mxu1 %v2690_v3 }
 0x432   :  { %2376 = vmatpush1.bf16.msra.mxu0 %v3306_v21  ;;  %2408 = vmatpush1.bf16.msra.mxu1 %v3315_v36 }
 0x433   :  { %2378 = vmatprep.subr.bf16.mxu0 %v3329_v42  ;;  %2410 = vmatprep.subr.bf16.mxu1 %v3340_v7 }
 0x436   :  { %2380 = vmatpush1.bf16.msra.mxu0 %v3342_v10  ;;  %2412 = vmatpush1.bf16.msra.mxu1 %v3351_v39 }
 0x437   :  { %2382 = vmatprep.subr.bf16.mxu0 %v3143_v14  ;;  %2414 = vmatprep.subr.bf16.mxu1 %v3363_v44 }
 0x43a   :  { %2384 = vmatpush1.bf16.msra.mxu0 %v3151_v26  ;;  %2416 = vmatpush1.bf16.msra.mxu1 %v3371_v51 }
 0x43b   :  { %2386 = vmatprep.subr.bf16.mxu0 %v3161_v45  ;;  %2418 = vmatprep.subr.bf16.mxu1 %v3383_v56 }
 0x43e   :  { %2388 = vmatpush1.bf16.msra.mxu0 %v3169_v62  ;;  %2420 = vmatpush1.bf16.msra.mxu1 %v3391_v60 }
 0x43f   :  { %2390 = vmatprep.subr.bf16.mxu0 %v3182_v31  ;;  %2422 = vmatprep.subr.bf16.mxu1 %v3404_v6 }
 0x442   :  { %2392 = vmatpush1.bf16.msra.mxu0 %v3193_v47  ;;  %2424 = vmatpush1.bf16.msra.mxu1 %v3417_v9 }
 0x443   :  { %2394 = vmatprep.subr.bf16.mxu0 %v3195_v13  ;;  %2426 = vmatprep.subr.bf16.mxu1 %v3420_v17 }
 0x446   :  { %2396 = vmatpush1.bf16.msra.mxu0 %v3211_v23  ;;  %2428 = vmatpush1.bf16.msra.mxu1 %v3437_v18 }
 0x447   :  { %2398 = vmatprep.subr.bf16.mxu0 %v3214_v28  ;;  %2430 = vmatprep.subr.bf16.mxu1 %v3440_v32 }
 0x44a   :  { %2400 = vmatpush1.bf16.msra.mxu0 %v3223_v35  ;;  %2432 = vmatpush1.bf16.msra.mxu1 %v3451_v19 }
 0x44b   :  { %2434 = vmatprep.subr.bf16.mxu0 %v3257_v8  ;;  %2466 = vmatprep.subr.bf16.mxu1 %v3268_v33 }
 0x500   :  { %v1130_v34 = vpop.f32.mrb[8].mxu0  ;;  %v1201_v38 = vpop.f32.mrb[8].mxu1 }
 0x501   :  { %v1206_v43 = vadd.f32 %v2017_v63, %v1130_v34  ;;  %v1132_v30 = vpop.f32.mrb[9].mxu0  ;;  %v1203_v46 = vpop.f32.mrb[9].mxu1  ;;  %v1208_v50 = vadd.f32 %v2019_v22, %v1201_v38 }
 0x502   :  { %v1207_v55 = vadd.f32 %v2018_v29, %v1132_v30  ;;  %v1209_v4 = vadd.f32 %v2020_v27, %v1203_v46 }
 0x503   :  { %v2021_v58 = vmul.f32 -1.442695, %v1206_v43 }
 0x504   :  { %v2022_v24 = vmul.f32 -1.442695, %v1207_v55  ;;  %v2023_v49 = vmul.f32 -1.442695, %v1209_v4 }
 0x505   :  { %2626 = vpow2.f32 %v2021_v58 }
 0x506   :  { %2628 = vpow2.f32 %v2022_v24 }
 0x507   :  { %2630 = vpow2.f32 %v2023_v49 }
 0x508   :  { %2632 = vtanh.f32 %v1208_v50 }
 0x50f   :  { %v2627_v53 = vpop.eup %2626 }
 0x510   :  { %v2629_v54 = vpop.eup %2628  ;;  %v1213_v57 = vadd.f32 1.0, %v2627_v53 }
 0x511   :  { %v1219_v59 = vadd.f32 1.0, %v2629_v54  ;;  %v2631_v61 = vpop.eup %2630 }
 0x512   :  { %2634 = vrcp.f32 %v1213_v57  ;;  %v2633_v1 = vpop.eup %2632  ;;  %v1226_v12 = vadd.f32 1.0, %v2631_v61  ;;  %v1783_v57 = vld [vmem:[%s3702_s1 + $0x180] sm:$0xff]  ;;  %v1792_v61 = vld [vmem:[%s3702_s1 + $0x1c8] sm:$0xff] }
 0x513   :  { %2636 = vrcp.f32 %v1219_v59  ;;  %v1787_v59 = vld [vmem:[%s3702_s1 + $0x1a0] sm:$0xff] }
 0x514   :  { %2638 = vrcp.f32 %v1226_v12  ;;  %v1795_v12 = vld [vmem:[%s3702_s1 + $0x1e0] sm:$0xff] }
 0x51c   :  { %v2635_v2 = vpop.eup %2634 }
 0x51d   :  { %v2637_v5 = vpop.eup %2636  ;;  %v1231_v11 = vmul.f32 %v2635_v2, %v2633_v1  ;;  %v1796_v1 = vld [vmem:[%s3702_s1 + $0x1e8] sm:$0xff]  ;;  %v2523_v2 = vpack.c.bf16 %v1787_v59, %v1783_v57 }
 0x51e   :  { %v1230_v25 = vmul.f32 %v2637_v5, %v3471_v52  ;;  %v2639_v15 = vpop.eup %2638  ;;  %v2027_v52 = vld [vmem:[%s3703_s0 + $0xb0] sm:$0xff]  ;;  %v2525_v5 = vpack.c.bf16 %v1796_v1, %v1792_v61 }
 0x520   :  { %v3524_v48 = vadd.f32 %v1231_v11, %v1230_v25  ;;  %v1791_v11 = vld [vmem:[%s3702_s1 + $0x1c0] sm:$0xff] }
 0x521   :  { %v2527_v25 = vpack.c.bf16 %v1795_v12, %v1791_v11 }
 0x522   :  { %2640 = vtanh.f32 %v3524_v48 }
 0x52c   :  { %v2641_v41 = vpop.eup %2640 }
 0x52d   :  { %v1234_v16 = vmul.f32 %v2641_v41, %v2639_v15  ;;  %v2034_v15 = vld [vmem:[%s3703_s0 + $0xc8] sm:$0xff] }
 0x52f   :  { %2024 = vst [vmem:[%s3704_s2 + $0x20] sm:$0xff] %v1234_v16  ;;  %1374 = vmatmul.mubr.f32.vlgmr.msra.gmra.mrb[10].mxu0 %v1234_v16  ;;  %1445 = vmatmul.mubr.f32.vlgmr.msra.gmra.mrb[10].mxu1 %v1234_v16 }
 0x530   :  { %2436 = vmatpush1.bf16.msra.mxu0 %v3270_v37  ;;  %2468 = vmatpush1.bf16.msra.mxu1 %v3279_v0 }
 0x531   :  { %2438 = vmatprep.subr.bf16.mxu0 %v3293_v40  ;;  %2470 = vmatprep.subr.bf16.mxu1 %v3304_v20 }
 0x532   :  { %1618 = vmatprep.mubr.f32.mxu0 %v2690_v3  ;;  %1689 = vmatprep.mubr.f32.mxu1 %v2690_v3 }
 0x534   :  { %2440 = vmatpush1.bf16.msra.mxu0 %v3306_v21  ;;  %2472 = vmatpush1.bf16.msra.mxu1 %v3315_v36 }
 0x535   :  { %2442 = vmatprep.subr.bf16.mxu0 %v3329_v42  ;;  %2474 = vmatprep.subr.bf16.mxu1 %v3340_v7 }
 0x538   :  { %2444 = vmatpush1.bf16.msra.mxu0 %v3342_v10  ;;  %2476 = vmatpush1.bf16.msra.mxu1 %v3351_v39 }
 0x539   :  { %2446 = vmatprep.subr.bf16.mxu0 %v3143_v14  ;;  %2478 = vmatprep.subr.bf16.mxu1 %v3363_v44  ;;  %v2025_v14 = vld [vmem:[%s3703_s0 + $0xa0] sm:$0xff] }
 0x53c   :  { %2448 = vmatpush1.bf16.msra.mxu0 %v3151_v26  ;;  %2480 = vmatpush1.bf16.msra.mxu1 %v3371_v51  ;;  %v2026_v26 = vld [vmem:[%s3703_s0 + $0xa8] sm:$0xff] }
 0x53d   :  { %2450 = vmatprep.subr.bf16.mxu0 %v3161_v45  ;;  %2482 = vmatprep.subr.bf16.mxu1 %v3383_v56 }
 0x540   :  { %2452 = vmatpush1.bf16.msra.mxu0 %v3169_v62  ;;  %2484 = vmatpush1.bf16.msra.mxu1 %v3391_v60 }
 0x541   :  { %2454 = vmatprep.subr.bf16.mxu0 %v3182_v31  ;;  %2486 = vmatprep.subr.bf16.mxu1 %v3404_v6 }
 0x544   :  { %2456 = vmatpush1.bf16.msra.mxu0 %v3193_v47  ;;  %2488 = vmatpush1.bf16.msra.mxu1 %v3417_v9 }
 0x545   :  { %2458 = vmatprep.subr.bf16.mxu0 %v3195_v13  ;;  %2490 = vmatprep.subr.bf16.mxu1 %v3420_v17 }
 0x548   :  { %2460 = vmatpush1.bf16.msra.mxu0 %v3211_v23  ;;  %2492 = vmatpush1.bf16.msra.mxu1 %v3437_v18 }
 0x549   :  { %2462 = vmatprep.subr.bf16.mxu0 %v3214_v28  ;;  %2494 = vmatprep.subr.bf16.mxu1 %v3440_v32 }
 0x54c   :  { %2464 = vmatpush1.bf16.msra.mxu0 %v3223_v35  ;;  %2496 = vmatpush1.bf16.msra.mxu1 %v3451_v19 }
 0x54d   :  { %2498 = vmatprep.subr.bf16.mxu0 %v3257_v8  ;;  %2530 = vmatprep.subr.bf16.mxu1 %v3268_v33  ;;  %v2028_v8 = vld [vmem:[%s3703_s0 + $0xb8] sm:$0xff] }
 0x602   :  { %v1375_v45 = vpop.f32.mrb[10].mxu0  ;;  %v1446_v62 = vpop.f32.mrb[10].mxu1 }
 0x603   :  { %v1451_v31 = vadd.f32 %v2025_v14, %v1375_v45  ;;  %v1377_v47 = vpop.f32.mrb[11].mxu0  ;;  %v1448_v13 = vpop.f32.mrb[11].mxu1  ;;  %v1453_v29 = vadd.f32 %v2027_v52, %v1446_v62 }
 0x604   :  { %v1452_v23 = vadd.f32 %v2026_v26, %v1377_v47  ;;  %v1454_v33 = vadd.f32 %v2028_v8, %v1448_v13  ;;  %v2036_v13 = vld [vmem:[%s3703_s0 + $0xd8] sm:$0xff] }
 0x605   :  { %v2029_v28 = vmul.f32 -1.442695, %v1451_v31 }
 0x606   :  { %v2030_v35 = vmul.f32 -1.442695, %v1452_v23  ;;  %v2031_v63 = vmul.f32 -1.442695, %v1454_v33 }
 0x607   :  { %2642 = vpow2.f32 %v2029_v28  ;;  %v2035_v28 = vld [vmem:[%s3703_s0 + $0xd0] sm:$0xff] }
 0x608   :  { %2644 = vpow2.f32 %v2030_v35 }
 0x609   :  { %2646 = vpow2.f32 %v2031_v63 }
 0x60a   :  { %2648 = vtanh.f32 %v1453_v29 }
 0x611   :  { %v2643_v34 = vpop.eup %2642 }
 0x612   :  { %v2645_v38 = vpop.eup %2644  ;;  %v1458_v43 = vadd.f32 1.0, %v2643_v34 }
 0x613   :  { %v1464_v30 = vadd.f32 1.0, %v2645_v38  ;;  %v2647_v46 = vpop.eup %2646 }
 0x614   :  { %2650 = vrcp.f32 %v1458_v43  ;;  %v2649_v55 = vpop.eup %2648  ;;  %v1471_v4 = vadd.f32 1.0, %v2647_v46 }
 0x615   :  { %2652 = vrcp.f32 %v1464_v30 }
 0x616   :  { %2654 = vrcp.f32 %v1471_v4 }
 0x61e   :  { %v2651_v58 = vpop.eup %2650 }
 0x61f   :  { %v2653_v24 = vpop.eup %2652  ;;  %v1476_v27 = vmul.f32 %v2651_v58, %v2649_v55 }
 0x620   :  { %v1475_v22 = vmul.f32 %v2653_v24, %v3524_v48  ;;  %v2655_v50 = vpop.eup %2654  ;;  %v2033_v48 = vld [vmem:[%s3703_s0 + $0xc0] sm:$0xff] }
 0x622   :  { %v3577_v49 = vadd.f32 %v1476_v27, %v1475_v22 }
 0x624   :  { %2656 = vtanh.f32 %v3577_v49 }
 0x62e   :  { %v2657_v53 = vpop.eup %2656 }
 0x62f   :  { %v1479_v54 = vmul.f32 %v2657_v53, %v2655_v50  ;;  %v2041_v50 = vld [vmem:[%s3703_s0 + $0xe0] sm:$0xff] }
 0x631   :  { %2032 = vst [vmem:[%s3704_s2 + $0x28] sm:$0xff] %v1479_v54  ;;  %1619 = vmatmul.mubr.f32.vlgmr.msra.gmra.mrb[12].mxu0 %v1479_v54  ;;  %1690 = vmatmul.mubr.f32.vlgmr.msra.gmra.mrb[12].mxu1 %v1479_v54 }
 0x632   :  { %2500 = vmatpush1.bf16.msra.mxu0 %v3270_v37  ;;  %2532 = vmatpush1.bf16.msra.mxu1 %v3279_v0  ;;  %v1764_v37 = vld [vmem:[%s3702_s1 + $0xe8] sm:$0xff] }
 0x633   :  { %2502 = vmatprep.subr.bf16.mxu0 %v3293_v40  ;;  %2534 = vmatprep.subr.bf16.mxu1 %v3304_v20  ;;  %v1759_v40 = vld [vmem:[%s3702_s1 + $0xc0] sm:$0xff] }
 0x634   :  { %1863 = vmatprep.mubr.f32.mxu0 %v2690_v3  ;;  %1934 = vmatprep.mubr.f32.mxu1 %v2690_v3  ;;  %v1760_v3 = vld [vmem:[%s3702_s1 + $0xc8] sm:$0xff]  ;;  %v1763_v20 = vld [vmem:[%s3702_s1 + $0xe0] sm:$0xff] }
 0x635   :  { %v2509_v0 = vpack.c.bf16 %v1764_v37, %v1760_v3 }
 0x636   :  { %2504 = vmatpush1.bf16.msra.mxu0 %v3306_v21  ;;  %2536 = vmatpush1.bf16.msra.mxu1 %v3315_v36  ;;  %v2511_v21 = vpack.c.bf16 %v1763_v20, %v1759_v40  ;;  %v1768_v36 = vld [vmem:[%s3702_s1 + $0x108] sm:$0xff] }
 0x637   :  { %2506 = vmatprep.subr.bf16.mxu0 %v3329_v42  ;;  %2538 = vmatprep.subr.bf16.mxu1 %v3340_v7  ;;  %v1772_v42 = vld [vmem:[%s3702_s1 + $0x128] sm:$0xff] }
 0x638   :  { %v2513_v7 = vpack.c.bf16 %v1772_v42, %v1768_v36  ;;  %v2044_v36 = vld [vmem:[%s3703_s0 + $0xf8] sm:$0xff] }
 0x63a   :  { %2508 = vmatpush1.bf16.msra.mxu0 %v3342_v10  ;;  %2540 = vmatpush1.bf16.msra.mxu1 %v3351_v39  ;;  %v1767_v10 = vld [vmem:[%s3702_s1 + $0x100] sm:$0xff] }
 0x63b   :  { %2542 = vmatprep.subr.bf16.mxu1 %v3363_v44  ;;  %2510 = vmatprep.subr.bf16.mxu0 %v2509_v0  ;;  %v1771_v39 = vld [vmem:[%s3702_s1 + $0x120] sm:$0xff] }
 0x63c   :  { %v2515_v44 = vpack.c.bf16 %v1771_v39, %v1767_v10 }
 0x63e   :  { %2544 = vmatpush1.bf16.msra.mxu1 %v3371_v51  ;;  %2512 = vmatpush1.bf16.msra.mxu0 %v2511_v21  ;;  %v1776_v51 = vld [vmem:[%s3702_s1 + $0x148] sm:$0xff] }
 0x63f   :  { %2546 = vmatprep.subr.bf16.mxu1 %v3383_v56  ;;  %2514 = vmatprep.subr.bf16.mxu0 %v2513_v7  ;;  %v1780_v56 = vld [vmem:[%s3702_s1 + $0x168] sm:$0xff]  ;;  %v2043_v7 = vld [vmem:[%s3703_s0 + $0xf0] sm:$0xff] }
 0x642   :  { %2548 = vmatpush1.bf16.msra.mxu1 %v3391_v60  ;;  %v1775_v60 = vld [vmem:[%s3702_s1 + $0x140] sm:$0xff]  ;;  %2516 = vmatpush1.bf16.msra.mxu0 %v2515_v44 }
 0x643   :  { %2550 = vmatprep.subr.bf16.mxu1 %v3404_v6  ;;  %v2517_v6 = vpack.c.bf16 %v1780_v56, %v1776_v51 }
 0x645   :  { %2518 = vmatprep.subr.bf16.mxu0 %v2517_v6 }
 0x646   :  { %2552 = vmatpush1.bf16.msra.mxu1 %v3417_v9  ;;  %v1779_v9 = vld [vmem:[%s3702_s1 + $0x160] sm:$0xff] }
 0x647   :  { %2554 = vmatprep.subr.bf16.mxu1 %v3420_v17  ;;  %v1784_v17 = vld [vmem:[%s3702_s1 + $0x188] sm:$0xff] }
 0x64a   :  { %2556 = vmatpush1.bf16.msra.mxu1 %v3437_v18  ;;  %v1788_v18 = vld [vmem:[%s3702_s1 + $0x1a8] sm:$0xff] }
 0x64b   :  { %2558 = vmatprep.subr.bf16.mxu1 %v3440_v32  ;;  %v2519_v32 = vpack.c.bf16 %v1779_v9, %v1775_v60 }
 0x64d   :  { %2520 = vmatpush1.bf16.msra.mxu0 %v2519_v32 }
 0x64e   :  { %2560 = vmatpush1.bf16.msra.mxu1 %v3451_v19  ;;  %v2521_v19 = vpack.c.bf16 %v1788_v18, %v1784_v17 }
 0x650   :  { %2522 = vmatprep.subr.bf16.mxu0 %v2521_v19 }
 0x651   :  { %2524 = vmatpush1.bf16.msra.mxu0 %v2523_v2 }
 0x652   :  { %2526 = vmatprep.subr.bf16.mxu0 %v2525_v5 }
 0x655   :  { %2528 = vmatpush1.bf16.msra.mxu0 %v2527_v25 }
 0x704   :  { %v1620_v41 = vpop.f32.mrb[12].mxu0  ;;  %v1691_v16 = vpop.f32.mrb[12].mxu1 }
 0x705   :  { %v1696_v14 = vadd.f32 %v2033_v48, %v1620_v41  ;;  %v1622_v26 = vpop.f32.mrb[13].mxu0  ;;  %v1693_v45 = vpop.f32.mrb[13].mxu1  ;;  %v1698_v8 = vadd.f32 %v2035_v28, %v1691_v16 }
 0x706   :  { %v1697_v62 = vadd.f32 %v2034_v15, %v1622_v26  ;;  %v1699_v23 = vadd.f32 %v2036_v13, %v1693_v45 }
 0x707   :  { %v2037_v31 = vmul.f32 -1.442695, %v1696_v14 }
 0x708   :  { %v2038_v47 = vmul.f32 -1.442695, %v1697_v62  ;;  %v2039_v35 = vmul.f32 -1.442695, %v1699_v23 }
 0x709   :  { %2658 = vpow2.f32 %v2037_v31 }
 0x70a   :  { %2660 = vpow2.f32 %v2038_v47 }
 0x70b   :  { %2662 = vpow2.f32 %v2039_v35 }
 0x70c   :  { %2664 = vtanh.f32 %v1698_v8 }
 0x713   :  { %v2659_v33 = vpop.eup %2658 }
 0x714   :  { %v2661_v52 = vpop.eup %2660  ;;  %v1703_v63 = vadd.f32 1.0, %v2659_v33 }
 0x715   :  { %v1709_v29 = vadd.f32 1.0, %v2661_v52  ;;  %v2663_v34 = vpop.eup %2662 }
 0x716   :  { %2666 = vrcp.f32 %v1703_v63  ;;  %v2665_v38 = vpop.eup %2664  ;;  %v1716_v55 = vadd.f32 1.0, %v2663_v34 }
 0x717   :  { %2668 = vrcp.f32 %v1709_v29 }
 0x718   :  { %2670 = vrcp.f32 %v1716_v55 }
 0x720   :  { %v2667_v43 = vpop.eup %2666 }
 0x721   :  { %v2669_v30 = vpop.eup %2668  ;;  %v1721_v46 = vmul.f32 %v2667_v43, %v2665_v38 }
 0x722   :  { %v1720_v58 = vmul.f32 %v2669_v30, %v3577_v49  ;;  %v2671_v27 = vpop.eup %2670  ;;  %v2042_v49 = vld [vmem:[%s3703_s0 + $0xe8] sm:$0xff] }
 0x724   :  { %v1722_v24 = vadd.f32 %v1721_v46, %v1720_v58 }
 0x726   :  { %2672 = vtanh.f32 %v1722_v24 }
 0x730   :  { %v2673_v4 = vpop.eup %2672 }
 0x731   :  { %v1724_v22 = vmul.f32 %v2673_v4, %v2671_v27 }
 0x733   :  { %2040 = vst [vmem:[%s3704_s2 + $0x30] sm:$0xff] %v1724_v22  ;;  %1864 = vmatmul.mubr.f32.vlgmr.msra.gmra.mrb[14].mxu0 %v1724_v22  ;;  %1935 = vmatmul.mubr.f32.vlgmr.msra.gmra.mrb[14].mxu1 %v1724_v22 }
 0x806   :  { %v1865_v53 = vpop.f32.mrb[14].mxu0  ;;  %v1936_v54 = vpop.f32.mrb[14].mxu1 }
 0x807   :  { %v1941_v3 = vadd.f32 %v2041_v50, %v1865_v53  ;;  %v1867_v37 = vpop.f32.mrb[15].mxu0  ;;  %v1938_v0 = vpop.f32.mrb[15].mxu1  ;;  %v1943_v39 = vadd.f32 %v2043_v7, %v1936_v54 }
 0x808   :  { %v1942_v40 = vadd.f32 %v2042_v49, %v1867_v37  ;;  %v1944_v42 = vadd.f32 %v2044_v36, %v1938_v0 }
 0x809   :  { %v2045_v20 = vmul.f32 -1.442695, %v1941_v3 }
 0x80a   :  { %v2046_v21 = vmul.f32 -1.442695, %v1942_v40  ;;  %v2047_v10 = vmul.f32 -1.442695, %v1944_v42 }
 0x80b   :  { %2674 = vpow2.f32 %v2045_v20 }
 0x80c   :  { %2676 = vpow2.f32 %v2046_v21 }
 0x80d   :  { %2678 = vpow2.f32 %v2047_v10 }
 0x80e   :  { %2680 = vtanh.f32 %v1943_v39 }
 0x815   :  { %v2675_v44 = vpop.eup %2674 }
 0x816   :  { %v2677_v51 = vpop.eup %2676  ;;  %v1948_v56 = vadd.f32 1.0, %v2675_v44 }
 0x817   :  { %v1954_v60 = vadd.f32 1.0, %v2677_v51  ;;  %v2679_v6 = vpop.eup %2678 }
 0x818   :  { %2682 = vrcp.f32 %v1948_v56  ;;  %v2681_v9 = vpop.eup %2680  ;;  %v1961_v19 = vadd.f32 1.0, %v2679_v6 }
 0x819   :  { %2684 = vrcp.f32 %v1954_v60 }
 0x81a   :  { %2686 = vrcp.f32 %v1961_v19 }
 0x822   :  { %v2683_v17 = vpop.eup %2682 }
 0x823   :  { %v2685_v18 = vpop.eup %2684  ;;  %v1966_v32 = vmul.f32 %v2683_v17, %v2681_v9 }
 0x824   :  { %v1965_v57 = vmul.f32 %v2685_v18, %v1722_v24  ;;  %v2687_v61 = vpop.eup %2686 }
 0x826   :  { %v1967_v59 = vadd.f32 %v1966_v32, %v1965_v57 }
 0x828   :  { %2688 = vtanh.f32 %v1967_v59  ;;  %1977 = vst [vmem:[%s3705_s4] sm:$0xff] %v1967_v59 }
 0x832   :  { %v2689_v1 = vpop.eup %2688 }
 0x833   :  { %v1969_v2 = vmul.f32 %v2689_v1, %v2687_v61 }
 0x835   :  { %2048 = vst [vmem:[%s3704_s2 + $0x38] sm:$0xff] %v1969_v2  ;;  %1975 = vst [vmem:[%s3706_s3] sm:$0xff] %v1969_v2 }

</bundles_post_ra>
